<compile_context>
chip_gen: v7x
topology: tpu7x:2x2x1
jax: 0.10.0
libtpu: 0.0.40
codegen_flags: <defaults>
</compile_context>

<pallas_src>
import math

import jax
import jax.numpy as jnp
from jax.experimental import pallas as pl
from jax.experimental.pallas import tpu as pltpu


def _gelu(x):
    # Exact (erf-based) GELU, matching torch.nn.functional.gelu default.
    return 0.5 * x * (1.0 + jax.lax.erf(x * (1.0 / math.sqrt(2.0))))


# ---------------- fused Pallas kernel ----------------

def _ff_fused_kernel(xm_ref, xt_ref, xb_ref, w1_ref, wdw_ref, w2_ref,
                     o_ref, hpad_ref):
    """One (batch, row-tile) step of the fused feed-forward.

    xm_ref:   [L, C]        current row tile of x, flattened (L = TH*W)
    xt_ref:   [W, C]        image row just above the tile (clamped)
    xb_ref:   [W, C]        image row just below the tile (clamped)
    w1_ref:   [C, CM]       1x1 conv #1 weights
    wdw_ref:  [9, CM]       depthwise 3x3 taps (row-major ky*3+kx), f32
    w2_ref:   [CM, C]       1x1 conv #2 weights
    o_ref:    [L, C]        output tile (flattened)
    hpad_ref: [L+2W+2, CM]  f32 VMEM scratch: guard row + top halo row + main
                            tile + bottom halo row + guard row of the h1 map.
    """
    L, C = xm_ref.shape
    W = xt_ref.shape[0]
    CM = w1_ref.shape[1]
    f32 = jnp.float32

    ti = pl.program_id(1)
    n_tiles = pl.num_programs(1)

    # ---- stage 1: 1x1 conv + GELU (main tile + recomputed 1-row halos) ----
    w1 = w1_ref[...]
    h_main = _gelu(jnp.dot(xm_ref[...], w1, preferred_element_type=f32))  # [L, CM]
    h_top = _gelu(jnp.dot(xt_ref[...], w1, preferred_element_type=f32))   # [W, CM]
    h_bot = _gelu(jnp.dot(xb_ref[...], w1, preferred_element_type=f32))   # [W, CM]

    # Edge tiles see zero padding on the h1 feature map (Conv2d pad=1 semantics).
    top_scale = jnp.where(ti > 0, 1.0, 0.0).astype(f32)
    bot_scale = jnp.where(ti < n_tiles - 1, 1.0, 0.0).astype(f32)

    # ---- assemble the vertically padded h1 band in VMEM scratch ----
    zrow = jnp.zeros((1, CM), f32)
    hpad_ref[0:1, :] = zrow                                   # guard slot
    hpad_ref[1:1 + W, :] = h_top * top_scale                  # h1 row above tile
    hpad_ref[1 + W:1 + W + L, :] = h_main                     # main h1 tile
    hpad_ref[1 + W + L:1 + 2 * W + L, :] = h_bot * bot_scale  # h1 row below tile
    hpad_ref[1 + 2 * W + L:2 + 2 * W + L, :] = zrow           # guard slot

    # Column masks emulate the width-1 zero padding: a horizontally shifted flat
    # read wraps across a spatial-row boundary exactly where the mask is zero.
    col = jax.lax.broadcasted_iota(jnp.int32, (L, 1), 0) % W
    left_mask = (col > 0).astype(f32)
    right_mask = (col < W - 1).astype(f32)

    # ---- stage 2: depthwise 3x3 conv + GELU (f32 accumulation) ----
    # Tap (ky, kx) for flat output row r lives at scratch row ky*W + kx + r.
    def _band(kx):
        return (hpad_ref[kx:kx + L, :] * wdw_ref[kx, :]
                + hpad_ref[W + kx:W + kx + L, :] * wdw_ref[3 + kx, :]
                + hpad_ref[2 * W + kx:2 * W + kx + L, :] * wdw_ref[6 + kx, :])

    acc = _band(1) + _band(0) * left_mask + _band(2) * right_mask
    h2 = _gelu(acc)

    # ---- stage 3: final 1x1 conv ----
    out = jnp.dot(h2.astype(w2_ref.dtype), w2_ref[...], preferred_element_type=f32)
    o_ref[...] = out.astype(o_ref.dtype)


# ---------------- wrapper ----------------

def _pick_row_tile(h, w, target):
    """Largest divisor of h that is <= target and keeps the flattened row block
    a multiple of 8 sublanes (or covers the full height)."""
    for t in range(min(h, max(1, target)), 0, -1):
        if h % t == 0 and ((t * w) % 8 == 0 or t == h):
            return t
    return h


def feed_forward(x, w1, w_dw, w2, *, compute_dtype=jnp.bfloat16, row_tile=8):
    """x: [b, h, w, c] -> [b, h, w, c] (same dtype as x).

    w1:   [C, C*mult]   (1x1 conv #1, channels-last matmul form)
    w_dw: [9, C*mult]   (depthwise 3x3 taps, row-major ky*3+kx)
    w2:   [C*mult, C]   (1x1 conv #2)
    compute_dtype: dtype of the matmul inputs (bf16 recommended); accumulation
                   and the depthwise stage stay in float32.
    """
    b, h, w, c = x.shape
    cm = w1.shape[1]
    th = _pick_row_tile(h, w, row_tile)   # TODO(synk): tune row_tile vs W*CM for real shapes
    n_tiles = h // th
    L = th * w

    out_dtype = x.dtype
    xc = x.astype(compute_dtype)
    x_flat = xc.reshape(b, h * w, c)      # free reshape (contiguous, metadata only)
    w1c = w1.astype(compute_dtype)
    w2c = w2.astype(compute_dtype)
    wdw = w_dw.astype(jnp.float32)

    in_specs = [
        # current row tile of x, flattened to (L, C)
        pl.BlockSpec((None, L, c), lambda bi, ti: (bi, ti, 0)),
        # single image row just above the tile (clamped; masked to zero when ti == 0)
        pl.BlockSpec((None, None, w, c),
                     lambda bi, ti: (bi, jnp.maximum(ti * th - 1, 0), 0, 0)),
        # single image row just below the tile (clamped; masked on the last tile)
        pl.BlockSpec((None, None, w, c),
                     lambda bi, ti: (bi, jnp.minimum(ti * th + th, h - 1), 0, 0)),
        # weights: constant block index -> fetched once, stay resident in VMEM
        pl.BlockSpec((c, cm), lambda bi, ti: (0, 0)),
        pl.BlockSpec((9, cm), lambda bi, ti: (0, 0)),
        pl.BlockSpec((cm, c), lambda bi, ti: (0, 0)),
    ]
    out_spec = pl.BlockSpec((None, L, c), lambda bi, ti: (bi, ti, 0))

    elem = jnp.dtype(compute_dtype).itemsize
    cost = pl.CostEstimate(
        flops=int(2 * b * h * w * cm * (2 * c + 9)),
        transcendentals=int(2 * b * h * w * cm),
        bytes_accessed=int(elem * (2 * b * h * w * c + c * cm + cm * c) + 4 * 9 * cm),
    )

    out_flat = pl.pallas_call(
        _ff_fused_kernel,
        out_shape=jax.ShapeDtypeStruct((b, h * w, c), out_dtype),
        grid_spec=pltpu.PrefetchScalarGridSpec(
            num_scalar_prefetch=0,
            grid=(b, n_tiles),
            in_specs=in_specs,
            out_specs=out_spec,
            scratch_shapes=[pltpu.VMEM((L + 2 * w + 2, cm), jnp.float32)],
        ),
        compiler_params=pltpu.CompilerParams(
            dimension_semantics=("parallel", "parallel"),
            vmem_limit_bytes=32 * 1024 * 1024,
        ),
        cost_estimate=cost,
    )(x_flat, xc, xc, w1c, wdw, w2c)
    return out_flat.reshape(b, h, w, c)


# ---------------- pure-JAX reference ----------------

def feed_forward_ref(x, w1, w_dw, w2):
    b, h, w, c = x.shape
    cm = w1.shape[1]
    h1 = _gelu(x.reshape(-1, c) @ w1).reshape(b, h, w, cm)
    hp = jnp.pad(h1, ((0, 0), (1, 1), (1, 1), (0, 0)))
    acc = jnp.zeros((b, h, w, cm), jnp.float32)
    for ky in range(3):
        for kx in range(3):
            acc = acc + hp[:, ky:ky + h, kx:kx + w, :] * w_dw[ky * 3 + kx, :]
    h2 = _gelu(acc)
    out = h2.reshape(-1, cm) @ w2
    return out.reshape(b, h, w, c)


if __name__ == "__main__":
    key = jax.random.PRNGKey(0)
    k_x, k_w1, k_dw, k_w2 = jax.random.split(key, 4)

    B, H, W, C = 2, 16, 16, 8
    MULT = 4
    CM = C * MULT

    x = jax.random.normal(k_x, (B, H, W, C), dtype=jnp.float32)

    # Deterministic synthetic weights (PyTorch conv weight shapes re-laid-out
    # for channels-last matmul / depthwise form):
    #   Conv2d(C, CM, 1)          weight [CM, C, 1, 1]  -> w1   [C, CM]
    #   Conv2d(CM, CM, 3, g=CM)   weight [CM, 1, 3, 3]  -> w_dw [9, CM]
    #   Conv2d(CM, C, 1)          weight [C, CM, 1, 1]  -> w2   [CM, C]
    w1_t = jax.random.normal(k_w1, (CM, C), dtype=jnp.float32) * 0.1
    w1 = w1_t.T                                            # [C, CM]
    wdw_t = jax.random.normal(k_dw, (CM, 3, 3), dtype=jnp.float32) * 0.1
    w_dw = wdw_t.reshape(CM, 9).T                          # [9, CM]
    w2_t = jax.random.normal(k_w2, (C, CM), dtype=jnp.float32) * 0.1
    w2 = w2_t.T                                            # [CM, C]

    ref = jax.block_until_ready(feed_forward_ref(x, w1, w_dw, w2))

    # float32 compute path: tight check against the f32 reference.
    out_f32 = jax.block_until_ready(
        feed_forward(x, w1, w_dw, w2, compute_dtype=jnp.float32))
    assert out_f32.shape == (B, H, W, C), out_f32.shape
    assert jnp.allclose(out_f32, ref, atol=1e-3, rtol=1e-3), (
        float(jnp.max(jnp.abs(out_f32 - ref))))

    # bf16 matmul-input path (f32 accumulation): looser tolerance.
    out_bf16 = jax.block_until_ready(
        feed_forward(x, w1, w_dw, w2, compute_dtype=jnp.bfloat16))
    assert out_bf16.shape == (B, H, W, C), out_bf16.shape
    assert jnp.allclose(out_bf16, ref, atol=3e-2, rtol=3e-1), (
        float(jnp.max(jnp.abs(out_bf16 - ref))))

    print("KERNEL_OK")
</pallas_src>

<mosaic_0001>
module attributes {stable_mosaic.version = 11 : i64} {
  func.func @_ff_fused_kernel(%arg0: i32, %arg1: i32, %arg2: memref<1x128x8xf32, #tpu.memory_space<vmem>>, %arg3: memref<1x1x16x8xf32, #tpu.memory_space<vmem>>, %arg4: memref<1x1x16x8xf32, #tpu.memory_space<vmem>>, %arg5: memref<8x32xf32, #tpu.memory_space<vmem>>, %arg6: memref<9x32xf32, #tpu.memory_space<vmem>>, %arg7: memref<32x8xf32, #tpu.memory_space<vmem>>, %arg8: memref<1x128x8xf32, #tpu.memory_space<vmem>>, %arg9: memref<162x32xf32, #tpu.memory_space<vmem>>) attributes {dimension_semantics = [#tpu.dimension_semantics<parallel>, #tpu.dimension_semantics<parallel>], iteration_bounds = array<i64: 2, 2>, scalar_prefetch = 0 : i64, scratch_operands = 1 : i64, tpu.core_type = #tpu.core_type<tc>, window_params = [{transform_indices = @transform_0, window_bounds = array<i64: 1, 128, 8>}, {transform_indices = @transform_1, window_bounds = array<i64: 1, 1, 16, 8>}, {transform_indices = @transform_2, window_bounds = array<i64: 1, 1, 16, 8>}, {pipeline_mode = #tpu.pipeline_mode<synchronous>, transform_indices = @transform_3, window_bounds = array<i64: 8, 32>}, {pipeline_mode = #tpu.pipeline_mode<synchronous>, transform_indices = @transform_4, window_bounds = array<i64: 9, 32>}, {pipeline_mode = #tpu.pipeline_mode<synchronous>, transform_indices = @transform_5, window_bounds = array<i64: 32, 8>}, {transform_indices = @transform_6, window_bounds = array<i64: 1, 128, 8>}]} {
    %c0 = arith.constant 0 : index
    %c0_0 = arith.constant 0 : index
    %0 = vector.load %arg5[%c0, %c0_0] : memref<8x32xf32, #tpu.memory_space<vmem>>, vector<8x32xf32>
    %c0_1 = arith.constant 0 : index
    %c0_2 = arith.constant 0 : index
    %c0_3 = arith.constant 0 : index
    %1 = vector.load %arg2[%c0_1, %c0_2, %c0_3] : memref<1x128x8xf32, #tpu.memory_space<vmem>>, vector<1x128x8xf32>
    %2 = vector.shape_cast %1 : vector<1x128x8xf32> to vector<128x8xf32>
    %cst = arith.constant dense<0.000000e+00> : vector<128x32xf32>
    %3 = tpu.matmul %2, %0, %cst {dimension_numbers = #tpu.dot_dimension_numbers<[1], [0], [0], [1], [0, 0, 1, 1], [], []>} : vector<128x8xf32>, vector<8x32xf32>, vector<128x32xf32> -> vector<128x32xf32>
    %cst_4 = arith.constant 5.000000e-01 : f32
    %4 = vector.broadcast %cst_4 : f32 to vector<128x32xf32>
    %5 = arith.mulf %4, %3 : vector<128x32xf32>
    %cst_5 = arith.constant 0.707106769 : f32
    %6 = vector.broadcast %cst_5 : f32 to vector<128x32xf32>
    %7 = arith.mulf %3, %6 : vector<128x32xf32>
    %8 = math.erf %7 : vector<128x32xf32>
    %cst_6 = arith.constant 1.000000e+00 : f32
    %9 = vector.broadcast %cst_6 : f32 to vector<128x32xf32>
    %10 = arith.addf %9, %8 : vector<128x32xf32>
    %11 = arith.mulf %5, %10 : vector<128x32xf32>
    %c0_7 = arith.constant 0 : index
    %c0_8 = arith.constant 0 : index
    %c0_9 = arith.constant 0 : index
    %c0_10 = arith.constant 0 : index
    %12 = vector.load %arg3[%c0_7, %c0_8, %c0_9, %c0_10] : memref<1x1x16x8xf32, #tpu.memory_space<vmem>>, vector<1x1x16x8xf32>
    %13 = vector.shape_cast %12 : vector<1x1x16x8xf32> to vector<16x8xf32>
    %cst_11 = arith.constant dense<0.000000e+00> : vector<16x32xf32>
    %14 = tpu.matmul %13, %0, %cst_11 {dimension_numbers = #tpu.dot_dimension_numbers<[1], [0], [0], [1], [0, 0, 1, 1], [], []>} : vector<16x8xf32>, vector<8x32xf32>, vector<16x32xf32> -> vector<16x32xf32>
    %cst_12 = arith.constant 5.000000e-01 : f32
    %15 = vector.broadcast %cst_12 : f32 to vector<16x32xf32>
    %16 = arith.mulf %15, %14 : vector<16x32xf32>
    %cst_13 = arith.constant 0.707106769 : f32
    %17 = vector.broadcast %cst_13 : f32 to vector<16x32xf32>
    %18 = arith.mulf %14, %17 : vector<16x32xf32>
    %19 = math.erf %18 : vector<16x32xf32>
    %cst_14 = arith.constant 1.000000e+00 : f32
    %20 = vector.broadcast %cst_14 : f32 to vector<16x32xf32>
    %21 = arith.addf %20, %19 : vector<16x32xf32>
    %22 = arith.mulf %16, %21 : vector<16x32xf32>
    %c0_15 = arith.constant 0 : index
    %c0_16 = arith.constant 0 : index
    %c0_17 = arith.constant 0 : index
    %c0_18 = arith.constant 0 : index
    %23 = vector.load %arg4[%c0_15, %c0_16, %c0_17, %c0_18] : memref<1x1x16x8xf32, #tpu.memory_space<vmem>>, vector<1x1x16x8xf32>
    %24 = vector.shape_cast %23 : vector<1x1x16x8xf32> to vector<16x8xf32>
    %cst_19 = arith.constant dense<0.000000e+00> : vector<16x32xf32>
    %25 = tpu.matmul %24, %0, %cst_19 {dimension_numbers = #tpu.dot_dimension_numbers<[1], [0], [0], [1], [0, 0, 1, 1], [], []>} : vector<16x8xf32>, vector<8x32xf32>, vector<16x32xf32> -> vector<16x32xf32>
    %cst_20 = arith.constant 5.000000e-01 : f32
    %26 = vector.broadcast %cst_20 : f32 to vector<16x32xf32>
    %27 = arith.mulf %26, %25 : vector<16x32xf32>
    %cst_21 = arith.constant 0.707106769 : f32
    %28 = vector.broadcast %cst_21 : f32 to vector<16x32xf32>
    %29 = arith.mulf %25, %28 : vector<16x32xf32>
    %30 = math.erf %29 : vector<16x32xf32>
    %cst_22 = arith.constant 1.000000e+00 : f32
    %31 = vector.broadcast %cst_22 : f32 to vector<16x32xf32>
    %32 = arith.addf %31, %30 : vector<16x32xf32>
    %33 = arith.mulf %27, %32 : vector<16x32xf32>
    %c0_i32 = arith.constant 0 : i32
    %34 = arith.cmpi sgt, %arg1, %c0_i32 : i32
    %cst_23 = arith.constant 1.000000e+00 : f32
    %cst_24 = arith.constant 0.000000e+00 : f32
    %35 = arith.select %34, %cst_23, %cst_24 : f32
    %c1_i32 = arith.constant 1 : i32
    %36 = arith.cmpi slt, %arg1, %c1_i32 : i32
    %cst_25 = arith.constant 1.000000e+00 : f32
    %cst_26 = arith.constant 0.000000e+00 : f32
    %37 = arith.select %36, %cst_25, %cst_26 : f32
    %cst_27 = arith.constant 0.000000e+00 : f32
    %38 = vector.broadcast %cst_27 : f32 to vector<1x32xf32>
    %c0_28 = arith.constant 0 : index
    %c0_29 = arith.constant 0 : index
    %39 = vector.load %arg9[%c0_28, %c0_29] : memref<162x32xf32, #tpu.memory_space<vmem>>, vector<1x32xf32>
    tpu.vector_store %arg9[%c0_28, %c0_29], %38 {strides = array<i32>} : memref<162x32xf32, #tpu.memory_space<vmem>>, vector<1x32xf32>,
    %40 = vector.broadcast %35 : f32 to vector<16x32xf32>
    %41 = arith.mulf %22, %40 : vector<16x32xf32>
    %c1 = arith.constant 1 : index
    %c0_30 = arith.constant 0 : index
    %42 = vector.load %arg9[%c1, %c0_30] : memref<162x32xf32, #tpu.memory_space<vmem>>, vector<16x32xf32>
    tpu.vector_store %arg9[%c1, %c0_30], %41 {strides = array<i32>} : memref<162x32xf32, #tpu.memory_space<vmem>>, vector<16x32xf32>,
    %c17 = arith.constant 17 : index
    %c0_31 = arith.constant 0 : index
    %43 = vector.load %arg9[%c17, %c0_31] : memref<162x32xf32, #tpu.memory_space<vmem>>, vector<128x32xf32>
    tpu.vector_store %arg9[%c17, %c0_31], %11 {strides = array<i32>} : memref<162x32xf32, #tpu.memory_space<vmem>>, vector<128x32xf32>,
    %44 = vector.broadcast %37 : f32 to vector<16x32xf32>
    %45 = arith.mulf %33, %44 : vector<16x32xf32>
    %c145 = arith.constant 145 : index
    %c0_32 = arith.constant 0 : index
    %46 = vector.load %arg9[%c145, %c0_32] : memref<162x32xf32, #tpu.memory_space<vmem>>, vector<16x32xf32>
    tpu.vector_store %arg9[%c145, %c0_32], %45 {strides = array<i32>} : memref<162x32xf32, #tpu.memory_space<vmem>>, vector<16x32xf32>,
    %c161 = arith.constant 161 : index
    %c0_33 = arith.constant 0 : index
    %47 = vector.load %arg9[%c161, %c0_33] : memref<162x32xf32, #tpu.memory_space<vmem>>, vector<1x32xf32>
    tpu.vector_store %arg9[%c161, %c0_33], %38 {strides = array<i32>} : memref<162x32xf32, #tpu.memory_space<vmem>>, vector<1x32xf32>,
    %48 = tpu.iota {dimensions = array<i32: 0>} : vector<128x1xi32>
    %c16_i32 = arith.constant 16 : i32
    %c0_i32_34 = arith.constant 0 : i32
    %49 = arith.cmpi eq, %c16_i32, %c0_i32_34 : i32
    %c1_i32_35 = arith.constant 1 : i32
    %50 = arith.select %49, %c1_i32_35, %c16_i32 : i32
    %51 = vector.broadcast %50 : i32 to vector<128x1xi32>
    %52 = arith.remsi %48, %51 : vector<128x1xi32>
    %c0_i32_36 = arith.constant 0 : i32
    %53 = vector.broadcast %c0_i32_36 : i32 to vector<128x1xi32>
    %54 = arith.cmpi ne, %52, %53 : vector<128x1xi32>
    %c0_i32_37 = arith.constant 0 : i32
    %55 = vector.broadcast %c0_i32_37 : i32 to vector<128x1xi32>
    %56 = arith.cmpi slt, %52, %55 : vector<128x1xi32>
    %c0_i32_38 = arith.constant 0 : i32
    %57 = arith.cmpi slt, %50, %c0_i32_38 : i32
    %58 = vector.broadcast %57 : i1 to vector<128x1xi1>
    %59 = vector.broadcast %58 : vector<128x1xi1> to vector<128x1xi1>
    %60 = arith.xori %56, %59 : vector<128x1xi1>
    %61 = arith.andi %60, %54 : vector<128x1xi1>
    %62 = vector.broadcast %50 : i32 to vector<128x1xi32>
    %63 = arith.addi %52, %62 : vector<128x1xi32>
    %64 = arith.select %61, %63, %52 : vector<128x1xi1>, vector<128x1xi32>
    %c0_i32_39 = arith.constant 0 : i32
    %65 = vector.broadcast %c0_i32_39 : i32 to vector<128x1xi32>
    %66 = arith.cmpi sgt, %64, %65 : vector<128x1xi32>
    %67 = arith.extui %66 : vector<128x1xi1> to vector<128x1xi32>
    %68 = arith.sitofp %67 : vector<128x1xi32> to vector<128x1xf32>
    %c15_i32 = arith.constant 15 : i32
    %69 = vector.broadcast %c15_i32 : i32 to vector<128x1xi32>
    %70 = arith.cmpi slt, %64, %69 : vector<128x1xi32>
    %71 = arith.extui %70 : vector<128x1xi1> to vector<128x1xi32>
    %72 = arith.sitofp %71 : vector<128x1xi32> to vector<128x1xf32>
    %c1_40 = arith.constant 1 : index
    %c0_41 = arith.constant 0 : index
    %73 = vector.load %arg9[%c1_40, %c0_41] : memref<162x32xf32, #tpu.memory_space<vmem>>, vector<128x32xf32>
    %c1_42 = arith.constant 1 : index
    %c0_43 = arith.constant 0 : index
    %74 = vector.load %arg6[%c1_42, %c0_43] : memref<9x32xf32, #tpu.memory_space<vmem>>, vector<1x32xf32>
    %75 = vector.shape_cast %74 : vector<1x32xf32> to vector<32xf32>
    %76 = vector.shape_cast %75 : vector<32xf32> to vector<1x32xf32>
    %77 = vector.broadcast %76 : vector<1x32xf32> to vector<128x32xf32>
    %78 = arith.mulf %73, %77 : vector<128x32xf32>
    %c17_44 = arith.constant 17 : index
    %c0_45 = arith.constant 0 : index
    %79 = vector.load %arg9[%c17_44, %c0_45] : memref<162x32xf32, #tpu.memory_space<vmem>>, vector<128x32xf32>
    %c4 = arith.constant 4 : index
    %c0_46 = arith.constant 0 : index
    %80 = vector.load %arg6[%c4, %c0_46] : memref<9x32xf32, #tpu.memory_space<vmem>>, vector<1x32xf32>
    %81 = vector.shape_cast %80 : vector<1x32xf32> to vector<32xf32>
    %82 = vector.shape_cast %81 : vector<32xf32> to vector<1x32xf32>
    %83 = vector.broadcast %82 : vector<1x32xf32> to vector<128x32xf32>
    %84 = arith.mulf %79, %83 : vector<128x32xf32>
    %85 = arith.addf %78, %84 : vector<128x32xf32>
    %c33 = arith.constant 33 : index
    %c0_47 = arith.constant 0 : index
    %86 = vector.load %arg9[%c33, %c0_47] : memref<162x32xf32, #tpu.memory_space<vmem>>, vector<128x32xf32>
    %c7 = arith.constant 7 : index
    %c0_48 = arith.constant 0 : index
    %87 = vector.load %arg6[%c7, %c0_48] : memref<9x32xf32, #tpu.memory_space<vmem>>, vector<1x32xf32>
    %88 = vector.shape_cast %87 : vector<1x32xf32> to vector<32xf32>
    %89 = vector.shape_cast %88 : vector<32xf32> to vector<1x32xf32>
    %90 = vector.broadcast %89 : vector<1x32xf32> to vector<128x32xf32>
    %91 = arith.mulf %86, %90 : vector<128x32xf32>
    %92 = arith.addf %85, %91 : vector<128x32xf32>
    %c0_49 = arith.constant 0 : index
    %c0_50 = arith.constant 0 : index
    %93 = vector.load %arg9[%c0_49, %c0_50] : memref<162x32xf32, #tpu.memory_space<vmem>>, vector<128x32xf32>
    %c0_51 = arith.constant 0 : index
    %c0_52 = arith.constant 0 : index
    %94 = vector.load %arg6[%c0_51, %c0_52] : memref<9x32xf32, #tpu.memory_space<vmem>>, vector<1x32xf32>
    %95 = vector.shape_cast %94 : vector<1x32xf32> to vector<32xf32>
    %96 = vector.shape_cast %95 : vector<32xf32> to vector<1x32xf32>
    %97 = vector.broadcast %96 : vector<1x32xf32> to vector<128x32xf32>
    %98 = arith.mulf %93, %97 : vector<128x32xf32>
    %c16 = arith.constant 16 : index
    %c0_53 = arith.constant 0 : index
    %99 = vector.load %arg9[%c16, %c0_53] : memref<162x32xf32, #tpu.memory_space<vmem>>, vector<128x32xf32>
    %c3 = arith.constant 3 : index
    %c0_54 = arith.constant 0 : index
    %100 = vector.load %arg6[%c3, %c0_54] : memref<9x32xf32, #tpu.memory_space<vmem>>, vector<1x32xf32>
    %101 = vector.shape_cast %100 : vector<1x32xf32> to vector<32xf32>
    %102 = vector.shape_cast %101 : vector<32xf32> to vector<1x32xf32>
    %103 = vector.broadcast %102 : vector<1x32xf32> to vector<128x32xf32>
    %104 = arith.mulf %99, %103 : vector<128x32xf32>
    %105 = arith.addf %98, %104 : vector<128x32xf32>
    %c32 = arith.constant 32 : index
    %c0_55 = arith.constant 0 : index
    %106 = vector.load %arg9[%c32, %c0_55] : memref<162x32xf32, #tpu.memory_space<vmem>>, vector<128x32xf32>
    %c6 = arith.constant 6 : index
    %c0_56 = arith.constant 0 : index
    %107 = vector.load %arg6[%c6, %c0_56] : memref<9x32xf32, #tpu.memory_space<vmem>>, vector<1x32xf32>
    %108 = vector.shape_cast %107 : vector<1x32xf32> to vector<32xf32>
    %109 = vector.shape_cast %108 : vector<32xf32> to vector<1x32xf32>
    %110 = vector.broadcast %109 : vector<1x32xf32> to vector<128x32xf32>
    %111 = arith.mulf %106, %110 : vector<128x32xf32>
    %112 = arith.addf %105, %111 : vector<128x32xf32>
    %113 = vector.broadcast %68 : vector<128x1xf32> to vector<128x32xf32>
    %114 = arith.mulf %112, %113 : vector<128x32xf32>
    %115 = arith.addf %92, %114 : vector<128x32xf32>
    %c2 = arith.constant 2 : index
    %c0_57 = arith.constant 0 : index
    %116 = vector.load %arg9[%c2, %c0_57] : memref<162x32xf32, #tpu.memory_space<vmem>>, vector<128x32xf32>
    %c2_58 = arith.constant 2 : index
    %c0_59 = arith.constant 0 : index
    %117 = vector.load %arg6[%c2_58, %c0_59] : memref<9x32xf32, #tpu.memory_space<vmem>>, vector<1x32xf32>
    %118 = vector.shape_cast %117 : vector<1x32xf32> to vector<32xf32>
    %119 = vector.shape_cast %118 : vector<32xf32> to vector<1x32xf32>
    %120 = vector.broadcast %119 : vector<1x32xf32> to vector<128x32xf32>
    %121 = arith.mulf %116, %120 : vector<128x32xf32>
    %c18 = arith.constant 18 : index
    %c0_60 = arith.constant 0 : index
    %122 = vector.load %arg9[%c18, %c0_60] : memref<162x32xf32, #tpu.memory_space<vmem>>, vector<128x32xf32>
    %c5 = arith.constant 5 : index
    %c0_61 = arith.constant 0 : index
    %123 = vector.load %arg6[%c5, %c0_61] : memref<9x32xf32, #tpu.memory_space<vmem>>, vector<1x32xf32>
    %124 = vector.shape_cast %123 : vector<1x32xf32> to vector<32xf32>
    %125 = vector.shape_cast %124 : vector<32xf32> to vector<1x32xf32>
    %126 = vector.broadcast %125 : vector<1x32xf32> to vector<128x32xf32>
    %127 = arith.mulf %122, %126 : vector<128x32xf32>
    %128 = arith.addf %121, %127 : vector<128x32xf32>
    %c34 = arith.constant 34 : index
    %c0_62 = arith.constant 0 : index
    %129 = vector.load %arg9[%c34, %c0_62] : memref<162x32xf32, #tpu.memory_space<vmem>>, vector<128x32xf32>
    %c8 = arith.constant 8 : index
    %c0_63 = arith.constant 0 : index
    %130 = vector.load %arg6[%c8, %c0_63] : memref<9x32xf32, #tpu.memory_space<vmem>>, vector<1x32xf32>
    %131 = vector.shape_cast %130 : vector<1x32xf32> to vector<32xf32>
    %132 = vector.shape_cast %131 : vector<32xf32> to vector<1x32xf32>
    %133 = vector.broadcast %132 : vector<1x32xf32> to vector<128x32xf32>
    %134 = arith.mulf %129, %133 : vector<128x32xf32>
    %135 = arith.addf %128, %134 : vector<128x32xf32>
    %136 = vector.broadcast %72 : vector<128x1xf32> to vector<128x32xf32>
    %137 = arith.mulf %135, %136 : vector<128x32xf32>
    %138 = arith.addf %115, %137 : vector<128x32xf32>
    %cst_64 = arith.constant 5.000000e-01 : f32
    %139 = vector.broadcast %cst_64 : f32 to vector<128x32xf32>
    %140 = arith.mulf %139, %138 : vector<128x32xf32>
    %cst_65 = arith.constant 0.707106769 : f32
    %141 = vector.broadcast %cst_65 : f32 to vector<128x32xf32>
    %142 = arith.mulf %138, %141 : vector<128x32xf32>
    %143 = math.erf %142 : vector<128x32xf32>
    %cst_66 = arith.constant 1.000000e+00 : f32
    %144 = vector.broadcast %cst_66 : f32 to vector<128x32xf32>
    %145 = arith.addf %144, %143 : vector<128x32xf32>
    %146 = arith.mulf %140, %145 : vector<128x32xf32>
    %c0_67 = arith.constant 0 : index
    %c0_68 = arith.constant 0 : index
    %147 = vector.load %arg7[%c0_67, %c0_68] : memref<32x8xf32, #tpu.memory_space<vmem>>, vector<32x8xf32>
    %cst_69 = arith.constant dense<0.000000e+00> : vector<128x8xf32>
    %148 = tpu.matmul %146, %147, %cst_69 {dimension_numbers = #tpu.dot_dimension_numbers<[1], [0], [0], [1], [0, 0, 1, 1], [], []>} : vector<128x32xf32>, vector<32x8xf32>, vector<128x8xf32> -> vector<128x8xf32>
    %c0_70 = arith.constant 0 : index
    %c0_71 = arith.constant 0 : index
    %c0_72 = arith.constant 0 : index
    %149 = vector.load %arg8[%c0_70, %c0_71, %c0_72] : memref<1x128x8xf32, #tpu.memory_space<vmem>>, vector<1x128x8xf32>
    %150 = vector.shape_cast %149 : vector<1x128x8xf32> to vector<128x8xf32>
    %151 = vector.shape_cast %148 : vector<128x8xf32> to vector<1x128x8xf32>
    tpu.vector_store %arg8[%c0_70, %c0_71, %c0_72], %151 {strides = array<i32>} : memref<1x128x8xf32, #tpu.memory_space<vmem>>, vector<1x128x8xf32>,
    return
  }
  func.func @transform_0(%arg0: i32, %arg1: i32) -> (i32, i32, i32) {
    %c0_i32 = arith.constant 0 : i32
    %c0_i32_0 = arith.constant 0 : i32
    return %arg0, %arg1, %c0_i32 : i32, i32, i32
  }
  func.func @transform_1(%arg0: i32, %arg1: i32) -> (i32, i32, i32, i32) {
    %c8_i32 = arith.constant 8 : i32
    %0 = arith.muli %arg1, %c8_i32 : i32
    %c1_i32 = arith.constant 1 : i32
    %1 = arith.subi %0, %c1_i32 : i32
    %c0_i32 = arith.constant 0 : i32
    %2 = arith.maxsi %1, %c0_i32 : i32
    %c0_i32_0 = arith.constant 0 : i32
    %c0_i32_1 = arith.constant 0 : i32
    %c0_i32_2 = arith.constant 0 : i32
    return %arg0, %2, %c0_i32_0, %c0_i32_1 : i32, i32, i32, i32
  }
  func.func @transform_2(%arg0: i32, %arg1: i32) -> (i32, i32, i32, i32) {
    %c8_i32 = arith.constant 8 : i32
    %0 = arith.muli %arg1, %c8_i32 : i32
    %c8_i32_0 = arith.constant 8 : i32
    %1 = arith.addi %0, %c8_i32_0 : i32
    %c15_i32 = arith.constant 15 : i32
    %2 = arith.minsi %1, %c15_i32 : i32
    %c0_i32 = arith.constant 0 : i32
    %c0_i32_1 = arith.constant 0 : i32
    %c0_i32_2 = arith.constant 0 : i32
    return %arg0, %2, %c0_i32, %c0_i32_1 : i32, i32, i32, i32
  }
  func.func @transform_3(%arg0: i32, %arg1: i32) -> (i32, i32) {
    %c0_i32 = arith.constant 0 : i32
    %c0_i32_0 = arith.constant 0 : i32
    %c0_i32_1 = arith.constant 0 : i32
    return %c0_i32, %c0_i32_0 : i32, i32
  }
  func.func @transform_4(%arg0: i32, %arg1: i32) -> (i32, i32) {
    %c0_i32 = arith.constant 0 : i32
    %c0_i32_0 = arith.constant 0 : i32
    %c0_i32_1 = arith.constant 0 : i32
    return %c0_i32, %c0_i32_0 : i32, i32
  }
  func.func @transform_5(%arg0: i32, %arg1: i32) -> (i32, i32) {
    %c0_i32 = arith.constant 0 : i32
    %c0_i32_0 = arith.constant 0 : i32
    %c0_i32_1 = arith.constant 0 : i32
    return %c0_i32, %c0_i32_0 : i32, i32
  }
  func.func @transform_6(%arg0: i32, %arg1: i32) -> (i32, i32, i32) {
    %c0_i32 = arith.constant 0 : i32
    %c0_i32_0 = arith.constant 0 : i32
    return %arg0, %arg1, %c0_i32 : i32, i32, i32
  }
}

</mosaic_0001>

<bundles_post_ra>
// kernel: tpu_custom_call.1
= control target key start
LH: loop header
LB: loop body
LE: loop exit
PB: predicated region body
PF: predicated region fallthrough
CT: control target
= control target key end

     0   :  { %s2472_s21 = smov 0   ;;  %s2474_s22 = smov 0   ;;  %s3392_s0 = inlined_call_operand.vmem [shape: f32[2,256,8], index: 0, kind: input, shape index: {}]   ;;  %s3393_s1 = inlined_call_operand.vmem [shape: f32[2,16,16,8], index: 1, kind: input, shape index: {}]   ;;  %s3394_s2 = inlined_call_operand.vmem [shape: f32[2,16,16,8], index: 2, kind: input, shape index: {}]   ;;  %s3395_s3 = inlined_call_operand.vmem [shape: f32[8,32], index: 3, kind: input, shape index: {}]   ;;  %s3396_s4 = inlined_call_operand.vmem [shape: f32[9,32], index: 4, kind: input, shape index: {}]   ;;  %s3397_s5 = inlined_call_operand.vmem [shape: f32[32,8], index: 5, kind: input, shape index: {}]   ;;  %s3398_s6 = inlined_call_operand.vmem [shape: f32[2,256,8], index: 6, kind: output, shape index: {}]  }
   0x1   :  { %s2476_s23 = smov 0   ;;  %s2478_s24 = smov 0  }
   0x2   :  { %s2480_s25 = smov 0  }
   0x3 LB: > { %s25_s26 = sadd.s32 1, %s2426_s23  ;;  %s28_s27 = sadd.s32 1, %s2430_s24  ;;  %s2434_s25 = sphi %s2480_s25, %s16_s25   ;;  %s2430_s24 = sphi %s2478_s24, %s3464_s24   ;;  %s2426_s23 = sphi %s2476_s23, %s3463_s23   ;;  %s2422_s22 = sphi %s2474_s22, %s3462_s22   ;;  %s2418_s21 = sphi %s2472_s21, %s3461_s21  }
   0x4   : > { %p26_p0 = scmp.ge.s32.totalorder %s25_s26, 2  ;;  %p2075_p1 = scmp.ge.s32.totalorder %s2434_s25, 1 }
   0x5   : > { %p297_p2 = scmp.lt.s32.totalorder %s2434_s25, 5 }
   0x6   : > { %s3466_s26 = smov (%p26_p0, %s25_s26), 0  ;;  %s3468_s27 = smov (!%p26_p0, %s28_s27), %s2430_s24 }
   0x7   : > { %p298_p3 = pnand %p2075_p1, %p297_p2  ;;  %p30_p4 = scmp.ge.s32.totalorder %s3468_s27, 2 }
   0x9   : > { %s3470_s27 = smov (%p30_p4, %s3468_s27), 0  ;;  %301 = sbr.rel (%p298_p3) target bundleno = 602 (0x25a), region = 44 }
  0x10   : > { %v415_v0 = vld [vmem:[%s3395_s3] sm:$0xff]  ;;  %s2076_s30 = sshll.u32 %s2418_s21, 4  ;;  %p362_p5 = scmp.lt.s32.totalorder %s2422_s22, 1  ;;  %vm432_vm0 = vcmask 64512   ;;  %vm896_vm1 = vcmask 253952   ;;  %v3399_v21 = vmov 0.0   ;;  %v926_v28 = vlaneseq }
  0x11   : > { %2207 = vmatprep.subr.mxu0 %v415_v0  ;;  %p364_p6 = scmp.lt.s32.totalorder %s2076_s30, 31  ;;  %2238 = vmatprep.subr.mxu1 %v415_v0  ;;  %s2079_s7 = sshll.u32 %s2418_s21, 3  ;;  %897 = vst.msk [vmem:[#allocation2] sm:$0x1] %vm896_vm1, %v3399_v21  ;;  %925 = vst.msk [vmem:[#allocation2 + $0xa1] sm:$0x1] %vm896_vm1, %v3399_v21 }
  0x12   : > { %2208 = vmatpush3.msra.mxu0 %v415_v0  ;;  %s3472_s22 = smov (!%p362_p5, %s2422_s22), 1  ;;  %2239 = vmatpush3.msra.mxu1 %v415_v0  ;;  %s2511_s9 = sadd.s32 4294967295, %s2079_s7  ;;  %v1720_v22 = vld [vmem:[%s3397_s5] sm:$0xff]  ;;  %v1721_v23 = vld [vmem:[%s3397_s5 + $0x8] sm:$0xff]  ;;  %v1722_v24 = vld [vmem:[%s3397_s5 + $0x10] sm:$0xff]  ;;  %v2583_v29 = vshrl.u32 %v926_v28, 7 }
  0x13   : > { %s3474_s30 = smov (!%p364_p6, %s2076_s30), 31  ;;  %2233 = vmatprep.subr.mxu0 %v415_v0  ;;  %s2509_s8 = sshll.u32 %s3472_s22, 5  ;;  %v2275_v25 = vpack.c.bf16 %v1721_v23, %v1720_v22  ;;  %v1723_v26 = vld [vmem:[%s3397_s5 + $0x18] sm:$0xff]  ;;  %vm901_vm9 = vcmask 261120  }
  0x14   : > { %s367_s10 = sadd.s32 %s2509_s8, %s3474_s30  ;;  %s389_s11 = sadd.s32 8, %s2079_s7  ;;  %v2279_v27 = vpack.c.bf16 %v1723_v26, %v1722_v24  ;;  %v930_v30 = vadd.s32 24, %v2583_v29  ;;  %v931_v32 = vadd.s32 32, %v2583_v29  ;;  %v947_v33 = vand.u32 15, %v2583_v29 }
  0x15   : > { %s2514_s12 = sshll.u32 %s367_s10, 3  ;;  %p390_p7 = scmp.lt.s32.totalorder %s389_s11, 15  ;;  %2276 = vmatprep.subr.bf16.mxu1 %v2275_v25  ;;  %v928_v34 = vadd.s32 8, %v2583_v29  ;;  %v932_v35 = vadd.s32 40, %v2583_v29  ;;  %v933_v36 = vadd.s32 48, %v2583_v29  ;;  %v929_v40 = vadd.s32 16, %v2583_v29 }
  0x16   : > { %s2520_s15 = scalar_lea.vmem %s3392_s0, %s2514_s12  ;;  %p373_p8 = scmp.gt.s32.totalorder %s2511_s9, 0  ;;  %v968_v31 = vand.u32 15, %v930_v30  ;;  %v975_v38 = vand.u32 15, %v931_v32  ;;  %vm1135_vm3 = vcmp.gt.s32.totalorder %v947_v33, 0  ;;  %v934_v43 = vadd.s32 56, %v2583_v29 }
  0x17   : > { %v416_v1 = vld [vmem:[%s2520_s15] sm:$0xff]  ;;  %v417_v2 = vld [vmem:[%s2520_s15 + $0x8] sm:$0xff]  ;;  %v418_v3 = vld [vmem:[%s2520_s15 + $0x10] sm:$0xff]  ;;  %s3476_s11 = smov (!%p390_p7, %s389_s11), 15  ;;  %p2081_p9 = scmp.lt.s32.totalorder %s2511_s9, 15  ;;  %v954_v39 = vand.u32 15, %v928_v34 }
  0x18   : > { %2209 = vmatprep.mubr.msk.f32.mxu0 %vm432_vm0, %v416_v1  ;;  %s3478_s11 = smov (!%p390_p7, %s3476_s11), 15  ;;  %v419_v4 = vld [vmem:[%s2520_s15 + $0x18] sm:$0xff]  ;;  %v420_v5 = vld [vmem:[%s2520_s15 + $0x20] sm:$0xff]  ;;  %v421_v6 = vld [vmem:[%s2520_s15 + $0x28] sm:$0xff]  ;;  %p894_p10 = scmp.lt.s32.totalorder %s2418_s21, 1  ;;  %vm2594_vm2 = vcmp.lt.s32.totalorder %v968_v31, 15 }
  0x19   : > { %2210 = vmatmul.mubr.msk.f32.vlgmr.msra.gmra.mrb[0].mxu0 %vm432_vm0, %v417_v2  ;;  %s374_s16 = scalar_select %p373_p8, %s2511_s9, 0  ;;  %v422_v7 = vld [vmem:[%s2520_s15 + $0x30] sm:$0xff]  ;;  %v423_v10 = vld [vmem:[%s2520_s15 + $0x38] sm:$0xff]  ;;  %v424_v11 = vld [vmem:[%s2520_s15 + $0x40] sm:$0xff]  ;;  %v982_v41 = vand.u32 15, %v932_v35  ;;  %v989_v42 = vand.u32 15, %v933_v36 }
  0x1a   : > { %2234 = vmatpush3.msra.mxu0 %v415_v0  ;;  %2212 = vmatprep.mubr.msk.f32.mxu0 %vm432_vm0, %v418_v3  ;;  %s2093_s17 = sshll.u32 %s3478_s11, 1  ;;  %v425_v12 = vld [vmem:[%s2520_s15 + $0x48] sm:$0xff]  ;;  %v426_v13 = vld [vmem:[%s2520_s15 + $0x50] sm:$0xff]  ;;  %v427_v14 = vld [vmem:[%s2520_s15 + $0x58] sm:$0xff]  ;;  %v935_v44 = vadd.s32 64, %v2583_v29  ;;  %p892_p11 = scmp.gt.s32.totalorder %s2418_s21, 0 }
  0x1b   : > { %s398_s18 = sadd.s32 %s2093_s17, %s2509_s8  ;;  %s3480_s16 = smov (!%p2081_p9, %s374_s16), 15  ;;  %v428_v15 = vld [vmem:[%s2520_s15 + $0x60] sm:$0xff]  ;;  %v429_v16 = vld [vmem:[%s2520_s15 + $0x68] sm:$0xff]  ;;  %v430_v17 = vld [vmem:[%s2520_s15 + $0x70] sm:$0xff]  ;;  %v936_v47 = vadd.s32 72, %v2583_v29  ;;  %v937_v48 = vadd.s32 80, %v2583_v29 }
  0x1c   : > { %s2095_s19 = sshll.u32 %s398_s18, 3  ;;  %s2086_s29 = sshll.u32 %s3480_s16, 1  ;;  %v431_v18 = vld [vmem:[%s2520_s15 + $0x78] sm:$0xff]  ;;  %v2611_v51 = vsel %vm1135_vm3, 1.0, %v3399_v21  ;;  %v2616_v52 = vsel %vm2594_vm2, 1.0, %v3399_v21  ;;  %vm1139_vm4 = vcmp.gt.s32.totalorder %v975_v38, 0 }
  0x1d   : > { %2213 = vmatmul.mubr.msk.f32.gmra.mrb[2].mxu0 %vm432_vm0, %v419_v4  ;;  %s400_s28 = scalar_lea.vmem %s3394_s2, %s2095_s19  ;;  %s381_s30 = sadd.s32 %s2086_s29, %s2509_s8  ;;  %3403 = vst [vmem:[#allocation3_spill] sm:$0xff] %v2611_v51  ;;  %vm2619_vm5 = vcmp.lt.s32.totalorder %v954_v39, 15  ;;  %v961_v55 = vand.u32 15, %v929_v40  ;;  %vm1188_vm6 = vcmp.lt.s32.totalorder %v982_v41, 15  ;;  %vm2623_vm7 = vcmp.gt.s32.totalorder %v989_v42, 0 }
  0x1e   : > { %2215 = vmatprep.mubr.msk.f32.mxu0 %vm432_vm0, %v420_v5  ;;  %v799_v8 = vld [vmem:[%s400_s28] sm:$0xff]  ;;  %v800_v9 = vld [vmem:[%s400_s28 + $0x8] sm:$0xff]  ;;  %s2088_s7 = sshll.u32 %s381_s30, 3  ;;  %v996_v57 = vand.u32 15, %v934_v43  ;;  %v1003_v58 = vand.u32 15, %v935_v44  ;;  %v2634_v60 = vsel %vm1139_vm4, 1.0, %v3399_v21  ;;  %s3343_s29 = scalar_lea.vmem %s3398_s6, %s2514_s12 }
  0x1f   : > { %2240 = vmatprep.mubr.msk.f32.mxu1 %vm432_vm0, %v799_v8  ;;  %s383_s11 = scalar_lea.vmem %s3393_s1, %s2088_s7  ;;  %v1010_v61 = vand.u32 15, %v936_v47  ;;  %v1017_v62 = vand.u32 15, %v937_v48  ;;  %v2640_v1 = vsel %vm1188_vm6, 1.0, %v3399_v21  ;;  %v938_v2 = vadd.s32 88, %v2583_v29 }
  0x20   : > { %2241 = vmatmul.mubr.msk.f32.vlgmr.msra.gmra.mrb[0].mxu1 %vm432_vm0, %v800_v9  ;;  %v706_v19 = vld [vmem:[%s383_s11] sm:$0xff]  ;;  %v707_v20 = vld [vmem:[%s383_s11 + $0x8] sm:$0xff]  ;;  %s2592_s20 = scalar_select %p894_p10, 1.0, 0.0  ;;  %v939_v3 = vadd.s32 96, %v2583_v29  ;;  %v2648_v5 = vsel %vm2619_vm5, 1.0, %v3399_v21 }
  0x21   : > { %2216 = vmatmul.mubr.msk.f32.gmra.mrb[4].mxu0 %vm432_vm0, %v421_v6  ;;  %2278 = vmatpush3.bf16.msra.mxu1 %v2275_v25  ;;  %s2631_s22 = scalar_select %p892_p11, 1.0, 0.0  ;;  %3408 = vst [vmem:[#allocation4_spill] sm:$0xff] %v2648_v5  ;;  %vm2650_vm8 = vcmp.gt.s32.totalorder %v961_v55, 0  ;;  %vm2659_vm10 = vcmp.lt.s32.totalorder %v996_v57, 15  ;;  %vm2663_vm11 = vcmp.gt.s32.totalorder %v1003_v58, 0 }
  0x22   : > { %2218 = vmatprep.mubr.msk.f32.mxu0 %vm432_vm0, %v422_v7  ;;  %2280 = vmatprep.subr.bf16.mxu1 %v2279_v27  ;;  %v920_v46 = vstv %s2592_s20  ;;  %v2657_v7 = vsel %vm2623_vm7, 1.0, %v3399_v21  ;;  %vm2670_vm12 = vcmp.lt.s32.totalorder %v1010_v61, 15  ;;  %vm2674_vm13 = vcmp.gt.s32.totalorder %v1017_v62, 0 }
  0x23   : > { %3411 = vst [vmem:[#allocation5_spill] sm:$0xff] %v2657_v7  ;;  %v1031_v22 = vand.u32 15, %v939_v3  ;;  %v2686_v25 = vsel %vm2650_vm8, 1.0, %v3399_v21  ;;  %v2691_v26 = vsel %vm2659_vm10, 1.0, %v3399_v21  ;;  %v2697_v28 = vsel %vm2663_vm11, 1.0, %v3399_v21 }
  0x24   : > { %3420 = vst [vmem:[#allocation6_spill] sm:$0xff] %v2686_v25  ;;  %3421 = vst [vmem:[#allocation7_spill] sm:$0xff] %v2691_v26  ;;  %v2702_v32 = vsel %vm2670_vm12, 1.0, %v3399_v21  ;;  %v2707_v33 = vsel %vm2674_vm13, 1.0, %v3399_v21 }
  0x25   : > { %2219 = vmatmul.mubr.msk.f32.gmra.mrb[6].mxu0 %vm432_vm0, %v423_v10  ;;  %2282 = vmatpush3.bf16.msra.mxu1 %v2279_v27  ;;  %v940_v10 = vadd.s32 104, %v2583_v29  ;;  %3422 = vst [vmem:[#allocation8_spill] sm:$0xff] %v2697_v28  ;;  %3423 = vst [vmem:[#allocation9_spill] sm:$0xff] %v2702_v32  ;;  %vm2713_vm15 = vcmp.gt.s32.totalorder %v1031_v22, 0 }
  0x26   : > { %2221 = vmatprep.mubr.msk.f32.mxu0 %vm432_vm0, %v424_v11  ;;  %3424 = vst [vmem:[#allocation10_spill] sm:$0xff] %v2707_v33  ;;  %v2738_v61 = vsel %vm2713_vm15, 1.0, %v3399_v21 }
  0x27   : > { %v1038_v30 = vand.u32 15, %v940_v10  ;;  %3435 = vst [vmem:[#allocation13_spill] sm:$0xff] %v2738_v61 }
  0x29   : > { %2222 = vmatmul.mubr.msk.f32.gmra.mrb[8].mxu0 %vm432_vm0, %v425_v12  ;;  %vm2719_vm1 = vcmp.lt.s32.totalorder %v1038_v30, 15 }
  0x2a   : > { %2224 = vmatprep.mubr.msk.f32.mxu0 %vm432_vm0, %v426_v13  ;;  %v2745_v3 = vsel %vm2719_vm1, 1.0, %v3399_v21 }
  0x2b   : > { %3436 = vst [vmem:[#allocation14_spill] sm:$0xff] %v2745_v3 }
  0x2d   : > { %2225 = vmatmul.mubr.msk.f32.gmra.mrb[10].mxu0 %vm432_vm0, %v427_v14 }
  0x2e   : > { %2227 = vmatprep.mubr.msk.f32.mxu0 %vm432_vm0, %v428_v15  ;;  %v941_v15 = vadd.s32 112, %v2583_v29 }
  0x30   : > { %v1045_v34 = vand.u32 15, %v941_v15 }
  0x31   : > { %2228 = vmatmul.mubr.msk.f32.gmra.mrb[12].mxu0 %vm432_vm0, %v429_v16 }
  0x32   : > { %2230 = vmatprep.mubr.msk.f32.mxu0 %vm432_vm0, %v430_v17  ;;  %vm2723_vm2 = vcmp.gt.s32.totalorder %v1045_v34, 0 }
  0x33   : > { %v2752_v8 = vsel %vm2723_vm2, 1.0, %v3399_v21 }
  0x34   : > { %3437 = vst [vmem:[#allocation15_spill] sm:$0xff] %v2752_v8  ;;  %v2915_v8 = vld [vmem:[%s3396_s4] ss:$0 sm:$0xff] }
  0x35   : > { %2231 = vmatmul.mubr.msk.f32.gmra.mrb[14].mxu0 %vm432_vm0, %v431_v18 }
  0x36   : > { %2235 = vmatprep.mubr.msk.f32.mxu0 %vm432_vm0, %v706_v19 }
  0x39   : > { %2236 = vmatmul.mubr.msk.f32.vlgmr.msra.gmra.mrb[16].mxu0 %vm432_vm0, %v707_v20  ;;  %v1024_v20 = vand.u32 15, %v938_v2 }
  0x3b   : > { %vm2709_vm14 = vcmp.lt.s32.totalorder %v1024_v20, 15 }
  0x3c   : > { %v2733_v58 = vsel %vm2709_vm14, 1.0, %v3399_v21 }
  0x3d   : > { %3434 = vst [vmem:[#allocation12_spill] sm:$0xff] %v2733_v58 }
  0xec   : > { %v2601_v45 = vpop.f32.mrb[0].mxu0 }
  0xed   : > { %v643_v49 = vmul.f32 0.70710677, %v2601_v45  ;;  %v2608_v50 = vpop.f32.mrb[1].mxu0  ;;  %v627_v41 = vmul.f32 0.5, %v2601_v45  ;;  %v2728_v45 = vadd.s32 120, %v2583_v29 }
  0xee   : > { %v642_v53 = vmul.f32 0.70710677, %v2608_v50  ;;  %v626_v44 = vmul.f32 0.5, %v2608_v50 }
  0xef   : > { %2324 = verf.f32 %v643_v49  ;;  %3433 = vst [vmem:[#allocation11_spill] sm:$0xff] %v2728_v45 }
  0xf0   : > { %2326 = verf.f32 %v642_v53  ;;  %v2627_v59 = vpop.f32.mrb[2].mxu0 }
  0xf1   : > { %v645_v63 = vmul.f32 0.70710677, %v2627_v59  ;;  %v2637_v0 = vpop.f32.mrb[3].mxu0  ;;  %v629_v29 = vmul.f32 0.5, %v2627_v59 }
  0xf2   : > { %v644_v4 = vmul.f32 0.70710677, %v2637_v0 }
  0xf3   : > { %2328 = verf.f32 %v645_v63  ;;  %v2668_v12 = vpop.f32.mrb[0].mxu1 }
  0xf4   : > { %2330 = verf.f32 %v644_v4  ;;  %v2217_v11 = vpop.f32.mrb[4].mxu0  ;;  %v2679_v18 = vpop.f32.mrb[1].mxu1  ;;  %v885_v24 = vmul.f32 0.70710677, %v2668_v12  ;;  %v628_v4 = vmul.f32 0.5, %v2637_v0  ;;  %v883_v0 = vmul.f32 0.5, %v2668_v12 }
  0xf5   : > { %v647_v16 = vmul.f32 0.70710677, %v2217_v11  ;;  %v567_v17 = vpop.f32.mrb[5].mxu0  ;;  %v884_v27 = vmul.f32 0.70710677, %v2679_v18  ;;  %v631_v59 = vmul.f32 0.5, %v2217_v11 }
  0xf6   : > { %v646_v23 = vmul.f32 0.70710677, %v567_v17  ;;  %v882_v34 = vmul.f32 0.5, %v2679_v18 }
  0xf7   : > { %2332 = verf.f32 %v647_v16  ;;  %v630_v16 = vmul.f32 0.5, %v567_v17 }
  0xf8   : > { %2334 = verf.f32 %v646_v23  ;;  %v2220_v31 = vpop.f32.mrb[6].mxu0 }
  0xf9   : > { %v2325_v35 = vpop.eup %2324  ;;  %v649_v36 = vmul.f32 0.70710677, %v2220_v31  ;;  %v577_v37 = vpop.f32.mrb[7].mxu0  ;;  %2336 = verf.f32 %v885_v24 }
  0xfa   : > { %v2327_v40 = vpop.eup %2326  ;;  %v675_v42 = vadd.f32 1.0, %v2325_v35  ;;  %v648_v43 = vmul.f32 0.70710677, %v577_v37  ;;  %2338 = verf.f32 %v884_v27  ;;  %v633_v27 = vmul.f32 0.5, %v2220_v31 }
  0xfb   : > { %v674_v47 = vadd.f32 1.0, %v2327_v40  ;;  %2340 = verf.f32 %v649_v36  ;;  %v632_v36 = vmul.f32 0.5, %v577_v37  ;;  %v2768_v37 = vld [vmem:[%s3396_s4 + $0x4] ss:$0 sm:$0xff] }
  0xfc   : > { %v691_v49 = vmul.f32 %v675_v42, %v627_v41  ;;  %2342 = verf.f32 %v648_v43  ;;  %v2223_v53 = vpop.f32.mrb[8].mxu0 }
  0xfd   : > { %v2329_v55 = vpop.eup %2328  ;;  %v690_v56 = vmul.f32 %v674_v47, %v626_v44  ;;  %v651_v57 = vmul.f32 0.70710677, %v2223_v53  ;;  %v587_v50 = vpop.f32.mrb[9].mxu0  ;;  %v2759_v38 = vmul.f32 0.5, %v2223_v53 }
  0xfe   : > { %v2331_v62 = vpop.eup %2330  ;;  %905 = vst.msk [vmem:[#allocation2 + $0x19] sm:$0xff] %vm901_vm9, %v691_v49  ;;  %v677_v63 = vadd.f32 1.0, %v2329_v55  ;;  %v650_v2 = vmul.f32 0.70710677, %v587_v50  ;;  %v2761_v40 = vmul.f32 0.5, %v587_v50 }
  0xff   : > { %904 = vst.msk [vmem:[#allocation2 + $0x11] sm:$0xff] %vm901_vm9, %v690_v56  ;;  %v676_v6 = vadd.f32 1.0, %v2331_v62  ;;  %2344 = verf.f32 %v651_v57  ;;  %v2776_v56 = vld [vmem:[%s3396_s4 + $0x5] ss:$0 sm:$0xff] }
 0x100   : > { %v693_v9 = vmul.f32 %v677_v63, %v629_v29  ;;  %2346 = verf.f32 %v650_v2  ;;  %v2226_v10 = vpop.f32.mrb[10].mxu0  ;;  %v2786_v63 = vld [vmem:[%s3396_s4 + $0x7] ss:$0 sm:$0xff] }
 0x101   : > { %v2333_v14 = vpop.eup %2332  ;;  %v692_v15 = vmul.f32 %v676_v6, %v628_v4  ;;  %v653_v20 = vmul.f32 0.70710677, %v2226_v10  ;;  %v597_v22 = vpop.f32.mrb[11].mxu0  ;;  %v2763_v43 = vmul.f32 0.5, %v2226_v10  ;;  %v2797_v10 = vld [vmem:[%s3396_s4 + $0x6] ss:$0 sm:$0xff] }
 0x102   : > { %v2335_v23 = vpop.eup %2334  ;;  %907 = vst.msk [vmem:[#allocation2 + $0x29] sm:$0xff] %vm901_vm9, %v693_v9  ;;  %v679_v24 = vadd.f32 1.0, %v2333_v14  ;;  %v652_v30 = vmul.f32 0.70710677, %v597_v22  ;;  %v2771_v53 = vmul.f32 0.5, %v597_v22 }
 0x103   : > { %v2337_v11 = vpop.eup %2336  ;;  %906 = vst.msk [vmem:[#allocation2 + $0x21] sm:$0xff] %vm901_vm9, %v692_v15  ;;  %v678_v35 = vadd.f32 1.0, %v2335_v23  ;;  %2348 = verf.f32 %v653_v20 }
 0x104   : > { %v2339_v17 = vpop.eup %2338  ;;  %v695_v39 = vmul.f32 %v679_v24, %v631_v59  ;;  %2350 = verf.f32 %v652_v30  ;;  %v2229_v12 = vpop.f32.mrb[12].mxu0  ;;  %v889_v41 = vadd.f32 1.0, %v2337_v11  ;;  %v2808_v24 = vld [vmem:[%s3396_s4 + $0x8] ss:$0 sm:$0xff] }
 0x105   : > { %v2341_v42 = vpop.eup %2340  ;;  %v694_v31 = vmul.f32 %v678_v35, %v630_v16  ;;  %v655_v18 = vmul.f32 0.70710677, %v2229_v12  ;;  %v607_v44 = vpop.f32.mrb[13].mxu0  ;;  %v888_v47 = vadd.f32 1.0, %v2339_v17  ;;  %v2779_v50 = vmul.f32 0.5, %v2229_v12  ;;  %v2799_v14 = vld [vmem:[#allocation2 + $0x19] sm:$0xff] }
 0x106   : > { %v2343_v48 = vpop.eup %2342  ;;  %909 = vst.msk [vmem:[#allocation2 + $0x39] sm:$0xff] %vm901_vm9, %v695_v39  ;;  %v681_v49 = vadd.f32 1.0, %v2341_v42  ;;  %v654_v54 = vmul.f32 0.70710677, %v607_v44  ;;  %v891_v55 = vmul.f32 %v889_v41, %v883_v0  ;;  %v2781_v29 = vld [vmem:[#allocation2 + $0x11] sm:$0xff]  ;;  %v2790_v6 = vmul.f32 0.5, %v607_v44 }
 0x107   : > { %908 = vst.msk [vmem:[#allocation2 + $0x31] sm:$0xff] %vm901_vm9, %v694_v31  ;;  %v680_v57 = vadd.f32 1.0, %v2343_v48  ;;  %2352 = verf.f32 %v655_v18  ;;  %v890_v62 = vmul.f32 %v888_v47, %v882_v34  ;;  %v2788_v2 = vld [vmem:[#allocation2 + $0x12] sm:$0xff]  ;;  %v2833_v41 = vld [vmem:[%s3396_s4 + $0x3] ss:$0 sm:$0xff]  ;;  %v2839_v31 = vmul.f32 %v2768_v37, %v2799_v14 }
 0x108   : > { %v697_v4 = vmul.f32 %v681_v49, %v633_v27  ;;  %2354 = verf.f32 %v654_v54  ;;  %v922_v9 = vmul.f32 %v920_v46, %v891_v55  ;;  %v2232_v59 = vpop.f32.mrb[14].mxu0  ;;  %v1349_v18 = vld [vmem:[#allocation2 + $0x18] sm:$0xff] }
 0x109   : > { %v2345_v15 = vpop.eup %2344  ;;  %v696_v16 = vmul.f32 %v680_v57, %v632_v36  ;;  %v921_v20 = vmul.f32 %v920_v46, %v890_v62  ;;  %v2803_v22 = vmul.f32 0.5, %v2232_v59  ;;  %v657_v0 = vmul.f32 0.70710677, %v2232_v59  ;;  %v617_v23 = vpop.f32.mrb[15].mxu0  ;;  %v2824_v17 = vld [vmem:[#allocation2 + $0x29] sm:$0xff] }
 0x10a   : > { %v2347_v27 = vpop.eup %2346  ;;  %911 = vst.msk [vmem:[#allocation2 + $0x49] sm:$0xff] %vm901_vm9, %v697_v4  ;;  %v683_v30 = vadd.f32 1.0, %v2345_v15  ;;  %924 = vst.msk [vmem:[#allocation2 + $0x99] sm:$0xff] %vm901_vm9, %v922_v9  ;;  %v656_v34 = vmul.f32 0.70710677, %v617_v23  ;;  %v2812_v11 = vld [vmem:[#allocation2 + $0x21] sm:$0xff]  ;;  %v2816_v46 = vmul.f32 %v2768_v37, %v2781_v29  ;;  %v2822_v36 = vmul.f32 %v2776_v56, %v2788_v2 }
 0x10b   : > { %v2818_v35 = vld [vmem:[#allocation2 + $0x20] sm:$0xff]  ;;  %910 = vst.msk [vmem:[#allocation2 + $0x41] sm:$0xff] %vm901_vm9, %v696_v16  ;;  %v682_v39 = vadd.f32 1.0, %v2347_v27  ;;  %923 = vst.msk [vmem:[#allocation2 + $0x91] sm:$0xff] %vm901_vm9, %v921_v20  ;;  %2356 = verf.f32 %v657_v0  ;;  %v2828_v12 = vmul.f32 0.5, %v617_v23  ;;  %v2844_v48 = vmul.f32 %v2786_v63, %v2812_v11  ;;  %v2850_v54 = vld [vmem:[#allocation2 + $0x28] sm:$0xff] }
 0x10c   : > { %v2835_v42 = vld [vmem:[#allocation2 + $0x22] sm:$0xff]  ;;  %v699_v44 = vmul.f32 %v683_v30, %v2759_v38  ;;  %2358 = verf.f32 %v656_v34  ;;  %v2237_v47 = vpop.f32.mrb[16].mxu0  ;;  %v2848_v49 = vmul.f32 %v2797_v10, %v2818_v35  ;;  %v2856_v38 = vld [vmem:[%s3396_s4 + $0x1] ss:$0 sm:$0xff]  ;;  %v2864_v59 = vmul.f32 %v2786_v63, %v2824_v17 }
 0x10d   : > { %v2349_v55 = vpop.eup %2348  ;;  %v698_v57 = vmul.f32 %v682_v39, %v2761_v40  ;;  %v792_v62 = vmul.f32 0.70710677, %v2237_v47  ;;  %v780_v4 = vpop.f32.mrb[17].mxu0  ;;  %v2860_v9 = vmul.f32 %v2808_v24, %v2835_v42  ;;  %v1496_v15 = vld [vmem:[#allocation2 + $0x1a] sm:$0xff]  ;;  %v2867_v20 = vmul.f32 0.5, %v2237_v47 }
 0x10e   : > { %v2351_v16 = vpop.eup %2350  ;;  %913 = vst.msk [vmem:[#allocation2 + $0x59] sm:$0xff] %vm901_vm9, %v699_v44  ;;  %v685_v40 = vadd.f32 1.0, %v2349_v55  ;;  %v791_v0 = vmul.f32 0.70710677, %v780_v4  ;;  %v2870_v23 = vmul.f32 %v2833_v41, %v1349_v18  ;;  %v2872_v27 = vld [vmem:[#allocation2 + $0x2a] sm:$0xff]  ;;  %v2877_v39 = vmul.f32 0.5, %v780_v4 }
 0x10f   : > { %3438 = vst [vmem:[#allocation16_spill] sm:$0xff] %v2860_v9  ;;  %v2874_v30 = vld [vmem:[#allocation2 + $0x31] sm:$0xff]  ;;  %912 = vst.msk [vmem:[#allocation2 + $0x51] sm:$0xff] %vm901_vm9, %v698_v57  ;;  %v684_v34 = vadd.f32 1.0, %v2351_v16  ;;  %2360 = verf.f32 %v792_v62  ;;  %v2881_v44 = vmul.f32 %v2797_v10, %v2850_v54  ;;  %v2887_v21 = vmul.f32 %v2776_v56, %v1496_v15  ;;  %v2895_v4 = vld [vmem:[%s3396_s4 + $0x2] ss:$0 sm:$0xff] }
 0x110   : > { %v2883_v47 = vld [vmem:[#allocation2 + $0x30] sm:$0xff]  ;;  %v701_v55 = vmul.f32 %v685_v40, %v2763_v43  ;;  %2362 = verf.f32 %v791_v0  ;;  %v1277_v13 = vmul.f32 %v2768_v37, %v2812_v11  ;;  %v2899_v16 = vmul.f32 %v2808_v24, %v2872_v27  ;;  %v2909_v19 = vld [vmem:[#allocation2 + $0x39] sm:$0xff] }
 0x111   : > { %3439 = vst [vmem:[#allocation17_spill] sm:$0xff] %v2881_v44  ;;  %v2353_v57 = vpop.eup %2352  ;;  %v700_v62 = vmul.f32 %v684_v34, %v2771_v53  ;;  %v1254_v43 = vmul.f32 %v2856_v38, %v2781_v29  ;;  %v2905_v40 = vmul.f32 %v2786_v63, %v2874_v30  ;;  %v2907_v0 = vld [vmem:[#allocation2 + $0x32] sm:$0xff]  ;;  %v2919_v29 = vmul.f32 %v2833_v41, %v2818_v35 }
 0x112   : > { %v2355_v53 = vpop.eup %2354  ;;  %915 = vst.msk [vmem:[#allocation2 + $0x69] sm:$0xff] %vm901_vm9, %v701_v55  ;;  %v687_v34 = vadd.f32 1.0, %v2353_v57  ;;  %v2923_v3 = vmul.f32 %v2797_v10, %v2883_v47  ;;  %v1539_v45 = vmul.f32 %v2776_v56, %v2835_v42  ;;  %v1255_v61 = vmul.f32 %v2856_v38, %v2799_v14  ;;  %v2934_v33 = vld [vmem:[#allocation2 + $0x38] sm:$0xff]  ;;  %v2955_v5 = vld [vmem:[#allocation2 + $0x41] sm:$0xff] }
 0x113   : > { %914 = vst.msk [vmem:[#allocation2 + $0x61] sm:$0xff] %vm901_vm9, %v700_v62  ;;  %v686_v55 = vadd.f32 1.0, %v2355_v53  ;;  %v2928_v57 = vadd.f32 %v1277_v13, %v1254_v43  ;;  %v1278_v58 = vmul.f32 %v2768_v37, %v2824_v17  ;;  %v1516_v28 = vmul.f32 %v2895_v4, %v2788_v2  ;;  %v2977_v44 = vld [vmem:[#allocation2 + $0x42] sm:$0xff] }
 0x114   : > { %v703_v32 = vmul.f32 %v687_v34, %v2779_v50  ;;  %v2941_v26 = vmul.f32 %v2808_v24, %v2907_v0  ;;  %v1317_v13 = vmul.f32 %v2786_v63, %v2909_v19  ;;  %v1370_v53 = vmul.f32 %v2915_v8, %v1349_v18  ;;  %v2949_v50 = vld [vmem:[#allocation2 + $0x3a] sm:$0xff] }
 0x115   : > { %v2357_v62 = vpop.eup %2356  ;;  %v702_v14 = vmul.f32 %v686_v55, %v2790_v6  ;;  %v1294_v43 = vadd.f32 %v1278_v58, %v1255_v61  ;;  %v1393_v7 = vmul.f32 %v2833_v41, %v2850_v54  ;;  %v1555_v9 = vadd.f32 %v1539_v45, %v1516_v28 }
 0x116   : > { %v2359_v34 = vpop.eup %2358  ;;  %917 = vst.msk [vmem:[#allocation2 + $0x79] sm:$0xff] %vm901_vm9, %v703_v32  ;;  %v689_v2 = vadd.f32 1.0, %v2357_v62  ;;  %v1432_v51 = vmul.f32 %v2797_v10, %v2934_v33  ;;  %v1517_v25 = vmul.f32 %v2895_v4, %v1496_v15  ;;  %v1540_v18 = vmul.f32 %v2776_v56, %v2872_v27  ;;  %v2967_v15 = vld [vmem:[#allocation2 + $0x40] sm:$0xff] }
 0x117   : > { %916 = vst.msk [vmem:[#allocation2 + $0x71] sm:$0xff] %vm901_vm9, %v702_v14  ;;  %v688_v58 = vadd.f32 1.0, %v2359_v34  ;;  %v1333_v61 = vadd.f32 %v1317_v13, %v1294_v43  ;;  %v1409_v6 = vadd.f32 %v1393_v7, %v1370_v53  ;;  %v1579_v28 = vmul.f32 %v2808_v24, %v2949_v50 }
 0x118   : > { %v705_v55 = vmul.f32 %v689_v2, %v2803_v22  ;;  %v1256_v32 = vmul.f32 %v2856_v38, %v2812_v11  ;;  %v1279_v45 = vmul.f32 %v2768_v37, %v2874_v30  ;;  %v1556_v14 = vadd.f32 %v1540_v18, %v1517_v25 }
 0x119   : > { %v2361_v62 = vpop.eup %2360  ;;  %v704_v13 = vmul.f32 %v688_v58, %v2828_v12  ;;  %v1448_v7 = vadd.f32 %v1432_v51, %v1409_v6  ;;  %v1318_v43 = vmul.f32 %v2786_v63, %v2955_v5  ;;  %v1371_v11 = vmul.f32 %v2915_v8, %v2818_v35 }
 0x11a   : > { %v2363_v22 = vpop.eup %2362  ;;  %919 = vst.msk [vmem:[#allocation2 + $0x89] sm:$0xff] %vm901_vm9, %v705_v55  ;;  %v796_v53 = vadd.f32 1.0, %v2361_v62  ;;  %v1295_v34 = vadd.f32 %v1279_v45, %v1256_v32  ;;  %v1394_v2 = vmul.f32 %v2833_v41, %v2883_v47  ;;  %v1595_v12 = vadd.f32 %v1579_v28, %v1556_v14  ;;  %v2985_v32 = vld [vmem:[#allocation2 + $0x49] sm:$0xff] }
 0x11b   : > { %918 = vst.msk [vmem:[#allocation2 + $0x81] sm:$0xff] %vm901_vm9, %v704_v13  ;;  %v795_v51 = vadd.f32 1.0, %v2363_v22  ;;  %v1480_v25 = vadd.f32 %v1448_v7, %v1333_v61  ;;  %v1433_v58 = vmul.f32 %v2797_v10, %v2967_v15  ;;  %v1518_v35 = vmul.f32 %v2895_v4, %v2835_v42 }
 0x11c   : > { %v798_v6 = vmul.f32 %v796_v53, %v2867_v20  ;;  %v1334_v18 = vadd.f32 %v1318_v43, %v1295_v34  ;;  %v1410_v55 = vadd.f32 %v1394_v2, %v1371_v11  ;;  %v1611_v62 = vmul.f32 %v2616_v52, %v1595_v12  ;;  %v2999_v43 = vld [vmem:[#allocation2 + $0x48] sm:$0xff] }
 0x11d   : > { %v797_v45 = vmul.f32 %v795_v51, %v2877_v39  ;;  %v1541_v61 = vmul.f32 %v2776_v56, %v2907_v0  ;;  %v1580_v28 = vmul.f32 %v2808_v24, %v2977_v44  ;;  %v3440_v13 = vstv %s2631_s22  ;;  %v3011_v12 = vld [vmem:[#allocation2 + $0x4a] sm:$0xff] }
 0x11e   : > { %v900_v7 = vmul.f32 %v3440_v13, %v798_v6  ;;  %v1449_v20 = vadd.f32 %v1433_v58, %v1410_v55  ;;  %v1257_v14 = vmul.f32 %v2856_v38, %v2824_v17  ;;  %v1280_v42 = vmul.f32 %v2768_v37, %v2909_v19 }
 0x11f   : > { %v3441_v39 = vmov %v3440_v13  ;;  %v1627_v52 = vadd.f32 %v1611_v62, %v1480_v25  ;;  %v1557_v53 = vadd.f32 %v1541_v61, %v1518_v35  ;;  %v1319_v34 = vmul.f32 %v2786_v63, %v2985_v32 }
 0x120   : > { %v899_v22 = vmul.f32 %v3441_v39, %v797_v45  ;;  %903 = vst.msk [vmem:[#allocation2 + $0x9] sm:$0xff] %vm901_vm9, %v900_v7  ;;  %v1465_v11 = vmul.f32 %v2634_v60, %v1449_v20  ;;  %v1296_v2 = vadd.f32 %v1280_v42, %v1257_v14  ;;  %v1372_v17 = vmul.f32 %v2915_v8, %v2850_v54 }
 0x121   : > { %v1395_v51 = vmul.f32 %v2833_v41, %v2934_v33  ;;  %v3016_v25 = vadd.f32 %v2905_v40, %v2928_v57  ;;  %v3019_v58 = vadd.f32 %v2941_v26, %v1555_v9  ;;  %v1659_v6 = vmul.f32 0.70710677, %v1627_v52  ;;  %v3029_v26 = vld [vmem:[#allocation2 + $0x51] sm:$0xff] }
 0x122   : > { %902 = vst.msk [vmem:[#allocation2 + $0x1] sm:$0xff] %vm901_vm9, %v899_v22  ;;  %v1434_v60 = vmul.f32 %v2797_v10, %v2999_v43  ;;  %v1481_v55 = vadd.f32 %v1465_v11, %v1334_v18  ;;  %v1596_v54 = vadd.f32 %v1580_v28, %v1557_v53  ;;  %v1335_v35 = vadd.f32 %v1319_v34, %v1296_v2  ;;  %v3031_v9 = vld [vmem:[#allocation2 + $0x50] sm:$0xff] }
 0x123   : > { %v1411_v45 = vadd.f32 %v1395_v51, %v1372_v17  ;;  %2364 = verf.f32 %v1659_v6  ;;  %v1519_v62 = vmul.f32 %v2895_v4, %v2872_v27  ;;  %v1542_v61 = vmul.f32 %v2776_v56, %v2949_v50 }
 0x124   : > { %v1581_v40 = vmul.f32 %v2808_v24, %v3011_v12  ;;  %v3033_v57 = vmul.f32 0.5, %v1627_v52  ;;  %v1628_v18 = vadd.f32 %v1596_v54, %v1481_v55  ;;  %v1281_v13 = vmul.f32 %v2768_v37, %v2955_v5 }
 0x125   : > { %v1450_v28 = vadd.f32 %v1434_v60, %v1411_v45  ;;  %v1558_v7 = vadd.f32 %v1542_v61, %v1519_v62  ;;  %v1258_v27 = vmul.f32 %v2856_v38, %v2874_v30  ;;  %v1373_v20 = vmul.f32 %v2915_v8, %v2883_v47 }
 0x126   : > { %v1396_v14 = vmul.f32 %v2833_v41, %v2967_v15  ;;  %v3043_v42 = vmul.f32 0.5, %v1628_v18  ;;  %v1660_v39 = vmul.f32 0.70710677, %v1628_v18  ;;  %v1320_v22 = vmul.f32 %v2786_v63, %v3029_v26 }
 0x127   : > { %v1435_v52 = vmul.f32 %v2797_v10, %v3031_v9  ;;  %v1348_v53 = vld [vmem:[#allocation2 + $0x10] sm:$0xff]  ;;  %v1482_v2 = vadd.f32 %v1450_v28, %v1335_v35  ;;  %v1597_v30 = vadd.f32 %v1581_v40, %v1558_v7  ;;  %v1297_v17 = vadd.f32 %v1281_v13, %v1258_v27 }
 0x128   : > { %v1232_v34 = vld [vmem:[#allocation2 + $0x9] sm:$0xff]  ;;  %v1412_v51 = vadd.f32 %v1396_v14, %v1373_v20  ;;  %v1390_v60 = vmul.f32 %v2833_v41, %v1348_v53  ;;  %v1369_v62 = vmul.f32 %v2915_v8, %v1348_v53  ;;  %2366 = verf.f32 %v1660_v39 }
 0x129   : > { %v1494_v11 = vld [vmem:[#allocation2 + $0xa] sm:$0xff]  ;;  %v1231_v47 = vld [vmem:[#allocation2 + $0x1] sm:$0xff]  ;;  %v1253_v54 = vmul.f32 %v2856_v38, %v1232_v34  ;;  %v1613_v34 = vmul.f32 %v2640_v1, %v1597_v30 }
 0x12a   : > { %v1346_v6 = vld [vmem:[#allocation2] sm:$0xff]  ;;  %v1515_v45 = vmul.f32 %v2895_v4, %v1494_v11  ;;  %v1252_v61 = vmul.f32 %v2856_v38, %v1231_v47  ;;  %v1347_v40 = vld [vmem:[#allocation2 + $0x8] sm:$0xff]  ;;  %v1408_v27 = vadd.f32 %v2919_v29, %v1369_v62  ;;  %v3442_v29 = vld [vmem:[#allocation17_spill] sm:$0xff] }
 0x12b   : > { %v1493_v55 = vld [vmem:[#allocation2 + $0x2] sm:$0xff]  ;;  %v1367_v18 = vmul.f32 %v2915_v8, %v1346_v6  ;;  %v1292_v28 = vadd.f32 %v2839_v31, %v1253_v54  ;;  %v1368_v13 = vmul.f32 %v2915_v8, %v1347_v40  ;;  %v3443_v30 = vld [vmem:[#allocation4_spill] sm:$0xff] }
 0x12c   : > { %v1514_v35 = vmul.f32 %v2895_v4, %v1493_v55  ;;  %v1554_v7 = vadd.f32 %v2887_v21, %v1515_v45  ;;  %v1291_v20 = vadd.f32 %v2816_v46, %v1252_v61  ;;  %v1447_v31 = vadd.f32 %v2923_v3, %v1408_v27  ;;  %v3076_v54 = vld [vmem:[#allocation2 + $0x52] sm:$0xff]  ;;  %v3445_v3 = vld [vmem:[#allocation3_spill] sm:$0xff] }
 0x12d   : > { %v1406_v14 = vadd.f32 %v1390_v60, %v1367_v18  ;;  %v1331_v11 = vadd.f32 %v2864_v59, %v1292_v28  ;;  %v1407_v47 = vadd.f32 %v2870_v23, %v1368_v13  ;;  %v2365_v6 = vpop.eup %2364  ;;  %v1629_v55 = vadd.f32 %v1613_v34, %v1482_v2  ;;  %v3444_v60 = vld [vmem:[#allocation6_spill] sm:$0xff] }
 0x12e   : > { %v1553_v53 = vadd.f32 %v2822_v36, %v1514_v35  ;;  %v1593_v39 = vadd.f32 %v2899_v16, %v1554_v7  ;;  %v1520_v46 = vmul.f32 %v2895_v4, %v2907_v0  ;;  %v1543_v36 = vmul.f32 %v2776_v56, %v2977_v44  ;;  %v3085_v7 = vld [vmem:[#allocation2 + $0x59] sm:$0xff] }
 0x12f   : > { %v1445_v21 = vadd.f32 %v2848_v49, %v1406_v14  ;;  %v1330_v1 = vadd.f32 %v2844_v48, %v1291_v20  ;;  %v1446_v59 = vadd.f32 %v3442_v29, %v1407_v47  ;;  %v1463_v16 = vmul.f32 %v3444_v60, %v1447_v31  ;;  %v3446_v49 = vld [vmem:[#allocation16_spill] sm:$0xff]  ;;  %v3447_v14 = vld [vmem:[#allocation5_spill] sm:$0xff] }
 0x130   : > { %v1609_v23 = vmul.f32 %v3443_v30, %v1593_v39  ;;  %v1592_v2 = vadd.f32 %v3446_v49, %v1553_v53  ;;  %v1691_v62 = vadd.f32 1.0, %v2365_v6  ;;  %v1661_v61 = vmul.f32 0.70710677, %v1629_v55  ;;  %v3098_v31 = vld [vmem:[#allocation2 + $0x58] sm:$0xff] }
 0x131   : > { %v1461_v45 = vmul.f32 %v3445_v3, %v1445_v21  ;;  %v1478_v0 = vadd.f32 %v1446_v59, %v1331_v11  ;;  %v1479_v18 = vadd.f32 %v1463_v16, %v3016_v25  ;;  %v3081_v35 = vmul.f32 0.5, %v1629_v55 }
 0x132   : > { %v1451_v48 = vadd.f32 %v1435_v52, %v1412_v51  ;;  %2368 = verf.f32 %v1661_v61  ;;  %v1336_v28 = vadd.f32 %v1320_v22, %v1297_v17  ;;  %v1582_v13 = vmul.f32 %v2808_v24, %v3076_v54  ;;  %v2367_v11 = vpop.eup %2366 }
 0x133   : > { %v1477_v40 = vadd.f32 %v1461_v45, %v1330_v1  ;;  %v1625_v27 = vadd.f32 %v1609_v23, %v1478_v0  ;;  %v1626_v20 = vadd.f32 %v3019_v58, %v1479_v18  ;;  %v1559_v34 = vadd.f32 %v1543_v36, %v1520_v46  ;;  %v3106_v1 = vld [vmem:[#allocation2 + $0x5a] sm:$0xff] }
 0x134   : > { %v1467_v53 = vmul.f32 %v3447_v14, %v1451_v48  ;;  %v3090_v25 = vmul.f32 %v1691_v62, %v3033_v57  ;;  %v1259_v52 = vmul.f32 %v2856_v38, %v2909_v19  ;;  %v1282_v22 = vmul.f32 %v2768_v37, %v2985_v32  ;;  %v3120_v62 = vld [vmem:[#allocation2 + $0x60] sm:$0xff] }
 0x135   : > { %v1624_v47 = vadd.f32 %v1592_v2, %v1477_v40  ;;  %v1657_v17 = vmul.f32 0.70710677, %v1625_v27  ;;  %v1658_v51 = vmul.f32 0.70710677, %v1626_v20  ;;  %v1598_v39 = vadd.f32 %v1582_v13, %v1559_v34  ;;  %v3118_v2 = vld [vmem:[#allocation2 + $0x61] sm:$0xff] }
 0x136   : > { %v1321_v58 = vmul.f32 %v2786_v63, %v3085_v7  ;;  %v3100_v21 = vmul.f32 0.5, %v1625_v27  ;;  %v1692_v55 = vadd.f32 1.0, %v2367_v11  ;;  %v1483_v57 = vadd.f32 %v1467_v53, %v1336_v28  ;;  %v3133_v27 = vld [vmem:[#allocation2 + $0x62] sm:$0xff] }
 0x137   : > { %v1656_v6 = vmul.f32 0.70710677, %v1624_v47  ;;  %2370 = verf.f32 %v1657_v17  ;;  %v1298_v46 = vadd.f32 %v1282_v22, %v1259_v52  ;;  %v1374_v19 = vmul.f32 %v2915_v8, %v2934_v33  ;;  %v3143_v52 = vld [vmem:[#allocation2 + $0x69] sm:$0xff] }
 0x138   : > { %v1397_v36 = vmul.f32 %v2833_v41, %v2999_v43  ;;  %v3108_v29 = vmul.f32 0.5, %v1626_v20  ;;  %v1630_v59 = vadd.f32 %v1598_v39, %v1483_v57  ;;  %v1436_v30 = vmul.f32 %v2797_v10, %v3098_v31  ;;  %v3145_v22 = vld [vmem:[#allocation2 + $0x68] sm:$0xff] }
 0x139   : > { %2372 = verf.f32 %v1656_v6  ;;  %v1640_v23 = vmul.f32 0.5, %v1624_v47  ;;  %v1337_v60 = vadd.f32 %v1321_v58, %v1298_v46  ;;  %v1521_v33 = vmul.f32 %v2895_v4, %v2949_v50  ;;  %v3448_v58 = vld [vmem:[#allocation7_spill] sm:$0xff] }
 0x13a   : > { %2374 = verf.f32 %v1658_v51  ;;  %v1413_v16 = vadd.f32 %v1397_v36, %v1374_v19  ;;  %v1662_v3 = vmul.f32 0.70710677, %v1630_v59  ;;  %v1544_v45 = vmul.f32 %v2776_v56, %v3011_v12 }
 0x13b   : > { %v1583_v49 = vmul.f32 %v2808_v24, %v3106_v1  ;;  %v3123_v61 = vmul.f32 %v1692_v55, %v3043_v42  ;;  %v3125_v0 = vmul.f32 0.5, %v1630_v59  ;;  %v1283_v48 = vmul.f32 %v2768_v37, %v3029_v26 }
 0x13c   : > { %v1452_v18 = vadd.f32 %v1436_v30, %v1413_v16  ;;  %v2369_v50 = vpop.eup %2368  ;;  %2376 = verf.f32 %v1662_v3  ;;  %v1560_v40 = vadd.f32 %v1544_v45, %v1521_v33  ;;  %v1375_v28 = vmul.f32 %v2915_v8, %v2967_v15 }
 0x13d   : > { %v1398_v13 = vmul.f32 %v2833_v41, %v3031_v9  ;;  %v1693_v20 = vadd.f32 1.0, %v2369_v50  ;;  %v1260_v42 = vmul.f32 %v2856_v38, %v2955_v5  ;;  %v1322_v14 = vmul.f32 %v2786_v63, %v3118_v2 }
 0x13e   : > { %v1437_v53 = vmul.f32 %v2797_v10, %v3120_v62  ;;  %v1484_v34 = vadd.f32 %v1452_v18, %v1337_v60  ;;  %v1599_v11 = vadd.f32 %v1583_v49, %v1560_v40  ;;  %v1545_v15 = vmul.f32 %v2776_v56, %v3076_v54  ;;  %v3168_v40 = vld [vmem:[#allocation2 + $0x6a] sm:$0xff] }
 0x13f   : > { %v1414_v47 = vadd.f32 %v1398_v13, %v1375_v28  ;;  %v3148_v17 = vmul.f32 %v1693_v20, %v3081_v35  ;;  %v1299_v5 = vadd.f32 %v1283_v48, %v1260_v42  ;;  %v1522_v51 = vmul.f32 %v2895_v4, %v2977_v44 }
 0x140   : > { %v1584_v39 = vmul.f32 %v2808_v24, %v3133_v27  ;;  %v1615_v6 = vmul.f32 %v3448_v58, %v1599_v11  ;;  %v1261_v57 = vmul.f32 %v2856_v38, %v2985_v32  ;;  %v1284_v46 = vmul.f32 %v2768_v37, %v3085_v7  ;;  %v3449_v32 = vld [vmem:[#allocation8_spill] sm:$0xff] }
 0x141   : > { %v1453_v55 = vadd.f32 %v1437_v53, %v1414_v47  ;;  %v2371_v19 = vpop.eup %2370  ;;  %v1323_v35 = vmul.f32 %v2786_v63, %v3143_v52  ;;  %v1376_v36 = vmul.f32 %v2915_v8, %v2999_v43  ;;  %v1399_v44 = vmul.f32 %v2833_v41, %v3098_v31 }
 0x142   : > { %v1438_v59 = vmul.f32 %v2797_v10, %v3145_v22  ;;  %v1689_v60 = vadd.f32 1.0, %v2371_v19  ;;  %v1631_v16 = vadd.f32 %v1615_v6, %v1484_v34  ;;  %v1561_v33 = vadd.f32 %v1545_v15, %v1522_v51  ;;  %v3177_v51 = vld [vmem:[#allocation2 + $0x71] sm:$0xff] }
 0x143   : > { %v2373_v30 = vpop.eup %2372  ;;  %v1469_v3 = vmul.f32 %v3449_v32, %v1453_v55  ;;  %v1338_v18 = vadd.f32 %v1322_v14, %v1299_v5  ;;  %v1300_v48 = vadd.f32 %v1284_v46, %v1261_v57  ;;  %v1415_v50 = vadd.f32 %v1399_v44, %v1376_v36  ;;  %v3181_v6 = vld [vmem:[#allocation2 + $0x70] sm:$0xff] }
 0x144   : > { %v2375_v45 = vpop.eup %2374  ;;  %v1688_v49 = vadd.f32 1.0, %v2373_v30  ;;  %v1663_v28 = vmul.f32 0.70710677, %v1631_v16  ;;  %v1600_v13 = vadd.f32 %v1584_v39, %v1561_v33  ;;  %v1523_v20 = vmul.f32 %v2895_v4, %v3011_v12  ;;  %v3195_v44 = vld [vmem:[#allocation2 + $0x72] sm:$0xff] }
 0x145   : > { %v1690_v43 = vadd.f32 1.0, %v2375_v45  ;;  %v1485_v53 = vadd.f32 %v1469_v3, %v1338_v18  ;;  %v1339_v11 = vadd.f32 %v1323_v35, %v1300_v48  ;;  %v1454_v34 = vadd.f32 %v1438_v59, %v1415_v50  ;;  %v3206_v33 = vld [vmem:[#allocation2 + $0x78] sm:$0xff] }
 0x146   : > { %v1704_v42 = vmul.f32 %v1688_v49, %v1640_v23  ;;  %v2377_v47 = vpop.eup %2376  ;;  %v1705_v15 = vmul.f32 %v1689_v60, %v3100_v21  ;;  %2378 = verf.f32 %v1663_v28  ;;  %v1546_v14 = vmul.f32 %v2776_v56, %v3106_v1 }
 0x147   : > { %v1585_v5 = vmul.f32 %v2808_v24, %v3168_v40  ;;  %v1706_v12 = vmul.f32 %v1690_v43, %v3108_v29  ;;  %v1694_v23 = vadd.f32 1.0, %v2377_v47  ;;  %v1647_v39 = vmul.f32 0.5, %v1631_v16  ;;  %v3200_v16 = vld [vmem:[#allocation2 + $0x79] sm:$0xff] }
 0x148   : > { %2251 = vmatprep.mubr.msk.f32.mxu1 %vm901_vm9, %v1704_v42  ;;  %v1632_v58 = vadd.f32 %v1600_v13, %v1485_v53  ;;  %v1486_v21 = vadd.f32 %v1454_v34, %v1339_v11  ;;  %v1562_v55 = vadd.f32 %v1546_v14, %v1523_v20  ;;  %v1262_v57 = vmul.f32 %v2856_v38, %v3029_v26  ;;  %v3227_v42 = vld [vmem:[#allocation2 + $0x7a] sm:$0xff] }
 0x149   : > { %2252 = vmatmul.mubr.msk.f32.vlgmr.msra.gmra.mrb[2].mxu1 %vm901_vm9, %v1705_v15  ;;  %v1285_v46 = vmul.f32 %v2768_v37, %v3118_v2  ;;  %v1324_v29 = vmul.f32 %v2786_v63, %v3177_v51  ;;  %v1377_v35 = vmul.f32 %v2915_v8, %v3031_v9  ;;  %v1400_v36 = vmul.f32 %v2833_v41, %v3120_v62 }
 0x14a   : > { %2254 = vmatprep.mubr.msk.f32.mxu1 %vm901_vm9, %v1706_v12  ;;  %v1664_v19 = vmul.f32 0.70710677, %v1632_v58  ;;  %v1710_v59 = vmul.f32 %v1694_v23, %v3125_v0  ;;  %v1601_v26 = vadd.f32 %v1585_v5, %v1562_v55  ;;  %v1439_v60 = vmul.f32 %v2797_v10, %v3181_v6  ;;  %v3450_v0 = vld [vmem:[#allocation9_spill] sm:$0xff] }
 0x14b   : > { %v1301_v30 = vadd.f32 %v1285_v46, %v1262_v57  ;;  %v1416_v32 = vadd.f32 %v1400_v36, %v1377_v35  ;;  %v1524_v3 = vmul.f32 %v2895_v4, %v3076_v54  ;;  %v1547_v9 = vmul.f32 %v2776_v56, %v3133_v27 }
 0x14c   : > { %2380 = verf.f32 %v1664_v19  ;;  %v1617_v45 = vmul.f32 %v3450_v0, %v1601_v26  ;;  %v1586_v49 = vmul.f32 %v2808_v24, %v3195_v44  ;;  %v1263_v18 = vmul.f32 %v2856_v38, %v3085_v7 }
 0x14d   : > { %2255 = vmatmul.mubr.msk.f32.gmra.mrb[4].mxu1 %vm901_vm9, %v3090_v25  ;;  %v1286_v48 = vmul.f32 %v2768_v37, %v3143_v52  ;;  %v1455_v54 = vadd.f32 %v1439_v60, %v1416_v32  ;;  %v1563_v50 = vadd.f32 %v1547_v9, %v1524_v3  ;;  %v1325_v43 = vmul.f32 %v2786_v63, %v3200_v16  ;;  %v3248_v3 = vld [vmem:[#allocation2 + $0x82] sm:$0xff] }
 0x14e   : > { %2257 = vmatprep.mubr.msk.f32.mxu1 %vm901_vm9, %v3123_v61  ;;  %v1378_v25 = vmul.f32 %v2915_v8, %v3098_v31  ;;  %v1633_v28 = vadd.f32 %v1617_v45, %v1486_v21  ;;  %v1401_v20 = vmul.f32 %v2833_v41, %v3145_v22  ;;  %v1440_v7 = vmul.f32 %v2797_v10, %v3206_v33  ;;  %v3451_v61 = vld [vmem:[#allocation10_spill] sm:$0xff]  ;;  %v3452_v45 = vld [vmem:[#allocation12_spill] sm:$0xff] }
 0x14f   : > { %v1302_v13 = vadd.f32 %v1286_v48, %v1263_v18  ;;  %v1340_v53 = vadd.f32 %v1324_v29, %v1301_v30  ;;  %v1471_v11 = vmul.f32 %v3451_v61, %v1455_v54  ;;  %v1525_v34 = vmul.f32 %v2895_v4, %v3106_v1  ;;  %v1268_v1 = vld [vmem:[#allocation2 + $0x81] sm:$0xff] }
 0x150   : > { %v1548_v47 = vmul.f32 %v2776_v56, %v3168_v40  ;;  %v2379_v31 = vpop.eup %2378  ;;  %v1665_v15 = vmul.f32 0.70710677, %v1633_v28  ;;  %v1602_v14 = vadd.f32 %v1586_v49, %v1563_v50  ;;  %v1417_v12 = vadd.f32 %v1401_v20, %v1378_v25  ;;  %v3255_v50 = vld [vmem:[#allocation2 + $0x89] sm:$0xff] }
 0x151   : > { %2258 = vmatmul.mubr.msk.f32.gmra.mrb[6].mxu1 %vm901_vm9, %v3148_v17  ;;  %v1341_v5 = vadd.f32 %v1325_v43, %v1302_v13  ;;  %v1695_v23 = vadd.f32 1.0, %v2379_v31  ;;  %v1487_v21 = vadd.f32 %v1471_v11, %v1340_v53  ;;  %v1587_v57 = vmul.f32 %v2808_v24, %v3227_v42  ;;  %v1383_v17 = vld [vmem:[#allocation2 + $0x80] sm:$0xff]  ;;  %v3453_v31 = vld [vmem:[#allocation13_spill] sm:$0xff] }
 0x152   : > { %2260 = vmatprep.mubr.msk.f32.mxu1 %vm901_vm9, %v1710_v59  ;;  %v1564_v55 = vadd.f32 %v1548_v47, %v1525_v34  ;;  %v1648_v46 = vmul.f32 0.5, %v1632_v58  ;;  %2382 = verf.f32 %v1665_v15  ;;  %v1456_v19 = vadd.f32 %v1440_v7, %v1417_v12  ;;  %v3278_v12 = vld [vmem:[#allocation2 + $0x8a] sm:$0xff] }
 0x153   : > { %v1287_v29 = vmul.f32 %v2768_v37, %v3177_v51  ;;  %v1711_v35 = vmul.f32 %v1695_v23, %v1647_v39  ;;  %v1649_v36 = vmul.f32 0.5, %v1633_v28  ;;  %v1634_v26 = vadd.f32 %v1602_v14, %v1487_v21 }
 0x154   : > { %v1603_v30 = vadd.f32 %v1587_v57, %v1564_v55  ;;  %v1264_v59 = vmul.f32 %v2856_v38, %v3118_v2  ;;  %v1326_v60 = vmul.f32 %v2786_v63, %v1268_v1  ;;  %v1379_v32 = vmul.f32 %v2915_v8, %v3120_v62  ;;  %v1307_v57 = vld [vmem:[#allocation2 + $0x91] sm:$0xff] }
 0x155   : > { %v1402_v58 = vmul.f32 %v2833_v41, %v3181_v6  ;;  %2261 = vmatmul.mubr.msk.f32.gmra.mrb[8].mxu1 %vm901_vm9, %v1711_v35  ;;  %v1666_v39 = vmul.f32 0.70710677, %v1634_v26  ;;  %v1488_v0 = vadd.f32 %v1456_v19, %v1341_v5  ;;  %v1441_v18 = vmul.f32 %v2797_v10, %v1383_v17 }
 0x156   : > { %v2381_v9 = vpop.eup %2380  ;;  %v1619_v49 = vmul.f32 %v3452_v45, %v1603_v30  ;;  %v1303_v48 = vadd.f32 %v1287_v29, %v1264_v59  ;;  %v1526_v62 = vmul.f32 %v2895_v4, %v3133_v27  ;;  %v1549_v25 = vmul.f32 %v2776_v56, %v3195_v44  ;;  %v3267_v27 = vld [vmem:[#allocation2 + $0x88] sm:$0xff] }
 0x157   : > { %v1696_v2 = vadd.f32 1.0, %v2381_v9  ;;  %v1418_v54 = vadd.f32 %v1402_v58, %v1379_v32  ;;  %2384 = verf.f32 %v1666_v39  ;;  %v1588_v28 = vmul.f32 %v2808_v24, %v3248_v3 }
 0x158   : > { %v3257_v43 = vadd.f32 %v1619_v49, %v1488_v0  ;;  %v1265_v7 = vmul.f32 %v2856_v38, %v3143_v52  ;;  %v1288_v53 = vmul.f32 %v2768_v37, %v3200_v16  ;;  %v1342_v11 = vadd.f32 %v1326_v60, %v1303_v48  ;;  %v1422_v0 = vld [vmem:[#allocation2 + $0x90] sm:$0xff] }
 0x159   : > { %v1712_v13 = vmul.f32 %v1696_v2, %v1648_v46  ;;  %v1457_v20 = vadd.f32 %v1441_v18, %v1418_v54  ;;  %v1565_v34 = vadd.f32 %v1549_v25, %v1526_v62  ;;  %v1327_v47 = vmul.f32 %v2786_v63, %v3255_v50  ;;  %v3454_v25 = vld [vmem:[#allocation11_spill] sm:$0xff] }
 0x15a   : > { %v1667_v61 = vmul.f32 0.70710677, %v3257_v43  ;;  %v1304_v14 = vadd.f32 %v1288_v53, %v1265_v7  ;;  %v1380_v52 = vmul.f32 %v2915_v8, %v3145_v22  ;;  %v1403_v5 = vmul.f32 %v2833_v41, %v3206_v33 }
 0x15b   : > { %2263 = vmatprep.mubr.msk.f32.mxu1 %vm901_vm9, %v1712_v13  ;;  %v1473_v15 = vmul.f32 %v3453_v31, %v1457_v20  ;;  %v1604_v23 = vadd.f32 %v1588_v28, %v1565_v34  ;;  %v1442_v21 = vmul.f32 %v2797_v10, %v3267_v27  ;;  %v1527_v55 = vmul.f32 %v2895_v4, %v3168_v40 }
 0x15c   : > { %2386 = verf.f32 %v1667_v61  ;;  %v2383_v46 = vpop.eup %2382  ;;  %v1343_v29 = vadd.f32 %v1327_v47, %v1304_v14  ;;  %v1419_v35 = vadd.f32 %v1403_v5, %v1380_v52  ;;  %v1550_v22 = vmul.f32 %v2776_v56, %v3227_v42  ;;  %v3458_v61 = vld [vmem:[#allocation14_spill] sm:$0xff] }
 0x15d   : > { %v1489_v19 = vadd.f32 %v1473_v15, %v1342_v11  ;;  %v1697_v30 = vadd.f32 1.0, %v2383_v46  ;;  %v1589_v59 = vmul.f32 %v2808_v24, %v3278_v12  ;;  %v1266_v60 = vmul.f32 %v2856_v38, %v3177_v51 }
 0x15e   : > { %v1289_v32 = vmul.f32 %v2768_v37, %v1268_v1  ;;  %v1458_v40 = vadd.f32 %v1442_v21, %v1419_v35  ;;  %v1566_v9 = vadd.f32 %v1550_v22, %v1527_v55  ;;  %v1328_v39 = vmul.f32 %v2786_v63, %v1307_v57  ;;  %v1569_v1 = vld [vmem:[#allocation2 + $0x92] sm:$0xff]  ;;  %v3459_v57 = vld [vmem:[#allocation15_spill] sm:$0xff]  ;;  %v1570_v35 = vld [vmem:[#allocation2 + $0x9a] sm:$0xff] }
 0x15f   : > { %v3291_v58 = vadd.f32 %v1604_v23, %v1489_v19  ;;  %v1713_v45 = vmul.f32 %v1697_v30, %v1649_v36  ;;  %v1381_v18 = vmul.f32 %v2915_v8, %v3181_v6  ;;  %v1404_v2 = vmul.f32 %v2833_v41, %v1383_v17  ;;  %v1423_v21 = vld [vmem:[#allocation2 + $0x98] sm:$0xff] }
 0x160   : > { %v1305_v49 = vadd.f32 %v1289_v32, %v1266_v60  ;;  %v1650_v48 = vmul.f32 0.5, %v1634_v26  ;;  %v1490_v51 = vadd.f32 %v1458_v40, %v1343_v29  ;;  %v1605_v62 = vadd.f32 %v1589_v59, %v1566_v9  ;;  %v1308_v26 = vld [vmem:[#allocation2 + $0x99] sm:$0xff] }
 0x161   : > { %v1668_v54 = vmul.f32 0.70710677, %v3291_v58  ;;  %v3455_v28 = vand.u32 15, %v3454_v25  ;;  %v2385_v20 = vpop.eup %2384  ;;  %2264 = vmatmul.mubr.msk.f32.gmra.mrb[10].mxu1 %vm901_vm9, %v1713_v45  ;;  %v1420_v7 = vadd.f32 %v1404_v2, %v1381_v18  ;;  %v1443_v6 = vmul.f32 %v2797_v10, %v1422_v0 }
 0x162   : > { %v1344_v36 = vadd.f32 %v1328_v39, %v1305_v49  ;;  %v1528_v17 = vmul.f32 %v2895_v4, %v3195_v44  ;;  %v1698_v53 = vadd.f32 1.0, %v2385_v20  ;;  %v1621_v11 = vmul.f32 %v3458_v61, %v1605_v62 }
 0x163   : > { %vm3300_vm3 = vcmp.lt.s32.totalorder %v3455_v28, 15  ;;  %2388 = verf.f32 %v1668_v54  ;;  %v1551_v34 = vmul.f32 %v2776_v56, %v3248_v3  ;;  %v1459_v47 = vadd.f32 %v1443_v6, %v1420_v7 }
 0x164   : > { %v1590_v31 = vmul.f32 %v2808_v24, %v1569_v1  ;;  %v1267_v15 = vmul.f32 %v2856_v38, %v3200_v16  ;;  %v1290_v14 = vmul.f32 %v2768_v37, %v3255_v50  ;;  %v1714_v52 = vmul.f32 %v1698_v53, %v1650_v48 }
 0x165   : > { %v1637_v5 = vadd.f32 %v1621_v11, %v1490_v51  ;;  %v1567_v44 = vadd.f32 %v1551_v34, %v1528_v17  ;;  %v1329_v23 = vmul.f32 %v2786_v63, %v1308_v26  ;;  %v1475_v46 = vmul.f32 %v3459_v57, %v1459_v47 }
 0x166   : > { %v2387_v55 = vpop.eup %2386  ;;  %v1306_v19 = vadd.f32 %v1290_v14, %v1267_v15  ;;  %v1382_v3 = vmul.f32 %v2915_v8, %v3206_v33  ;;  %v1405_v29 = vmul.f32 %v2833_v41, %v3267_v27  ;;  %2266 = vmatprep.mubr.msk.f32.mxu1 %vm901_vm9, %v1714_v52  ;;  %v1651_v37 = vmul.f32 0.5, %v3257_v43 }
 0x167   : > { %v1699_v38 = vadd.f32 1.0, %v2387_v55  ;;  %v1669_v16 = vmul.f32 0.70710677, %v1637_v5  ;;  %v1606_v50 = vadd.f32 %v1590_v31, %v1567_v44  ;;  %v1491_v63 = vadd.f32 %v1475_v46, %v1344_v36 }
 0x168   : > { %v1345_v22 = vadd.f32 %v1329_v23, %v1306_v19  ;;  %v1421_v30 = vadd.f32 %v1405_v29, %v1382_v3  ;;  %v1444_v59 = vmul.f32 %v2797_v10, %v1423_v21  ;;  %v1529_v8 = vmul.f32 %v2895_v4, %v3227_v42 }
 0x169   : > { %v1715_v60 = vmul.f32 %v1699_v38, %v1651_v37  ;;  %2390 = verf.f32 %v1669_v16  ;;  %v1552_v41 = vmul.f32 %v2776_v56, %v3278_v12  ;;  %v1638_v33 = vadd.f32 %v1606_v50, %v1491_v63 }
 0x16a   : > { %v1460_v27 = vadd.f32 %v1444_v59, %v1421_v30  ;;  %v1591_v43 = vmul.f32 %v2808_v24, %v1570_v35  ;;  %v3460_v9 = vmov 0.0   ;;  %v1652_v4 = vmul.f32 0.5, %v3291_v58 }
 0x16b   : > { %2267 = vmatmul.mubr.msk.f32.gmra.mrb[12].mxu1 %vm901_vm9, %v1715_v60  ;;  %v1568_v32 = vadd.f32 %v1552_v41, %v1529_v8  ;;  %v1670_v40 = vmul.f32 0.70710677, %v1638_v33  ;;  %v2134_v10 = vsel %vm3300_vm3, 1.0, %v3460_v9  ;;  %v1653_v2 = vmul.f32 0.5, %v1637_v5 }
 0x16c   : > { %v1492_v0 = vadd.f32 %v1460_v27, %v1345_v22  ;;  %v1654_v62 = vmul.f32 0.5, %v1638_v33 }
 0x16d   : > { %v2389_v39 = vpop.eup %2388  ;;  %v1607_v45 = vadd.f32 %v1591_v43, %v1568_v32  ;;  %2392 = verf.f32 %v1670_v40 }
 0x16e   : > { %v1700_v42 = vadd.f32 1.0, %v2389_v39 }
 0x16f   : > { %v1623_v56 = vmul.f32 %v2134_v10, %v1607_v45 }
 0x170   : > { %v1716_v12 = vmul.f32 %v1700_v42, %v1652_v4 }
 0x171   : > { %v1639_v49 = vadd.f32 %v1623_v56, %v1492_v0 }
 0x172   : > { %2269 = vmatprep.mubr.msk.f32.mxu1 %vm901_vm9, %v1716_v12 }
 0x173   : > { %v2391_v24 = vpop.eup %2390  ;;  %v1671_v18 = vmul.f32 0.70710677, %v1639_v49  ;;  %v1655_v28 = vmul.f32 0.5, %v1639_v49 }
 0x174   : > { %v1701_v48 = vadd.f32 1.0, %v2391_v24 }
 0x175   : > { %2394 = verf.f32 %v1671_v18 }
 0x176   : > { %v1717_v54 = vmul.f32 %v1701_v48, %v1653_v2 }
 0x177   : > { %v2393_v51 = vpop.eup %2392 }
 0x178   : > { %2270 = vmatmul.mubr.msk.f32.gmra.mrb[14].mxu1 %vm901_vm9, %v1717_v54  ;;  %v1702_v1 = vadd.f32 1.0, %v2393_v51 }
 0x17a   : > { %v1718_v58 = vmul.f32 %v1702_v1, %v1654_v62 }
 0x17c   : > { %2272 = vmatprep.mubr.msk.f32.mxu1 %vm901_vm9, %v1718_v58 }
 0x17f   : > { %v2395_v25 = vpop.eup %2394 }
 0x180   : > { %v1703_v13 = vadd.f32 1.0, %v2395_v25 }
 0x182   : > { %v1719_v20 = vmul.f32 %v1703_v13, %v1655_v28 }
 0x184   : > { %2273 = vmatmul.mubr.msk.f32.gmra.mrb[16].mxu1 %vm901_vm9, %v1719_v20 }
 0x21c   : > { %v2253_v36 = vpop.f32.mrb[2].mxu1 }
 0x21d   : > { %1918 = vst.msk [vmem:[%s3343_s29 + $0x8] sm:$0xff] %vm432_vm0, %v2253_v36  ;;  %v1838_v7 = vpop.f32.mrb[3].mxu1 }
 0x21e   : > { %1917 = vst.msk [vmem:[%s3343_s29] sm:$0xff] %vm432_vm0, %v1838_v7 }
 0x220   : > { %v2256_v6 = vpop.f32.mrb[4].mxu1 }
 0x221   : > { %1920 = vst.msk [vmem:[%s3343_s29 + $0x18] sm:$0xff] %vm432_vm0, %v2256_v6  ;;  %v1848_v17 = vpop.f32.mrb[5].mxu1 }
 0x222   : > { %1919 = vst.msk [vmem:[%s3343_s29 + $0x10] sm:$0xff] %vm432_vm0, %v1848_v17 }
 0x224   : > { %v2259_v26 = vpop.f32.mrb[6].mxu1 }
 0x225   : > { %1922 = vst.msk [vmem:[%s3343_s29 + $0x28] sm:$0xff] %vm432_vm0, %v2259_v26  ;;  %v1858_v53 = vpop.f32.mrb[7].mxu1 }
 0x226   : > { %1921 = vst.msk [vmem:[%s3343_s29 + $0x20] sm:$0xff] %vm432_vm0, %v1858_v53 }
 0x228   : > { %v2262_v61 = vpop.f32.mrb[8].mxu1 }
 0x229   : > { %1924 = vst.msk [vmem:[%s3343_s29 + $0x38] sm:$0xff] %vm432_vm0, %v2262_v61  ;;  %v1868_v11 = vpop.f32.mrb[9].mxu1 }
 0x22a   : > { %1923 = vst.msk [vmem:[%s3343_s29 + $0x30] sm:$0xff] %vm432_vm0, %v1868_v11 }
 0x234   : > { %v2265_v34 = vpop.f32.mrb[10].mxu1 }
 0x235   : > { %1926 = vst.msk [vmem:[%s3343_s29 + $0x48] sm:$0xff] %vm432_vm0, %v2265_v34  ;;  %v1878_v47 = vpop.f32.mrb[11].mxu1 }
 0x236   : > { %1925 = vst.msk [vmem:[%s3343_s29 + $0x40] sm:$0xff] %vm432_vm0, %v1878_v47 }
 0x23e   : > { %v2268_v31 = vpop.f32.mrb[12].mxu1 }
 0x23f   : > { %1928 = vst.msk [vmem:[%s3343_s29 + $0x58] sm:$0xff] %vm432_vm0, %v2268_v31  ;;  %v1888_v15 = vpop.f32.mrb[13].mxu1 }
 0x240   : > { %1927 = vst.msk [vmem:[%s3343_s29 + $0x50] sm:$0xff] %vm432_vm0, %v1888_v15 }
 0x24b   : > { %v2271_v14 = vpop.f32.mrb[14].mxu1 }
 0x24c   : > { %1930 = vst.msk [vmem:[%s3343_s29 + $0x68] sm:$0xff] %vm432_vm0, %v2271_v14  ;;  %v1898_v52 = vpop.f32.mrb[15].mxu1 }
 0x24d   : > { %1929 = vst.msk [vmem:[%s3343_s29 + $0x60] sm:$0xff] %vm432_vm0, %v1898_v52 }
 0x257   : > { %v2274_v5 = vpop.f32.mrb[16].mxu1 }
 0x258   : > { %1932 = vst.msk [vmem:[%s3343_s29 + $0x78] sm:$0xff] %vm432_vm0, %v2274_v5  ;;  %v1908_v44 = vpop.f32.mrb[17].mxu1 }
 0x259   : > { %1931 = vst.msk [vmem:[%s3343_s29 + $0x70] sm:$0xff] %vm432_vm0, %v1908_v44 }
 0x25a PF: > { %s16_s25 = sadd.s32 1, %s2434_s25   ;;  %s3461_s21 = smov %s2426_s23 }
 0x25b   : > { %p13_p12 = scmp.ge.s32.totalorder %s16_s25, 6   ;;  %s3462_s22 = smov %s2430_s24 }
 0x25c   : > { %s3463_s23 = smov %s3466_s26  ;;  %s3464_s24 = smov %s3470_s27 }
 0x25d   :  { %15 = sbr.rel (!%p13_p12) target bundleno = 3 (0x3), region = 80 }

</bundles_post_ra>
